<compile_context>
chip_gen: v7x
topology: tpu7x:2x2x1
jax: 0.10.0
libtpu: 0.0.40
codegen_flags: <defaults>
</compile_context>

<pallas_src>
import functools

import jax
import jax.numpy as jnp
from jax import lax
from jax.experimental import pallas as pl
from jax.experimental.pallas import tpu as pltpu


def _round_up(v, m):
    return (v + m - 1) // m * m


# ----------------------------------------------------------------------------
# Pallas kernel: num_layers applications of one LatticeEncoderLayer
# ----------------------------------------------------------------------------
def _make_kernel(d_real: int, dp: int):
    inv_d = 1.0 / float(d_real)

    def kernel(x_ref, a_f_ref, a_b_ref, mcat_ref, w1_ref, w2_ref, b1_ref,
               p_ref, out_ref):
        layer = pl.program_id(0)

        # Layer 0: load the input activations into the resident output block,
        # which then serves as the x-carry across all subsequent layers.
        @pl.when(layer == 0)
        def _():
            out_ref[...] = x_ref[...]

        x = out_ref[...]                                   # [Np, Dp] f32

        p = p_ref[...]                                     # packed (8, Dp) f32
        gcn_bias = p[0:1, :]
        b2 = p[1:2, :]
        g1, be1 = p[2:3, :], p[3:4, :]
        g2, be2 = p[4:5, :], p[5:6, :]

        def layernorm(v, gamma, beta):
            # Padded columns of v are exactly zero; use the real D for stats
            # and mask padded columns so they stay zero for the next layer.
            mu = jnp.sum(v, axis=-1, keepdims=True) * inv_d
            col = lax.broadcasted_iota(jnp.int32, v.shape, 1)
            diff = jnp.where(col < d_real, v - mu, 0.0)
            var = jnp.sum(diff * diff, axis=-1, keepdims=True) * inv_d
            return diff * lax.rsqrt(var + 1e-5) * gamma + beta

        # --- bidirectional GCNConv + combining linear (Theta folded into W) ---
        z = jnp.dot(x.astype(jnp.bfloat16), mcat_ref[...],
                    preferred_element_type=jnp.float32)     # [Np, 2*Dp]
        zb = z.astype(jnp.bfloat16)
        agg = (jnp.dot(a_f_ref[...], zb[:, :dp],
                       preferred_element_type=jnp.float32)
               + jnp.dot(a_b_ref[...], zb[:, dp:],
                         preferred_element_type=jnp.float32))
        x = layernorm(x + agg + gcn_bias, g1, be1)           # dropout1 = id

        # --- feed-forward block ---
        h = jnp.dot(x.astype(jnp.bfloat16), w1_ref[...],
                    preferred_element_type=jnp.float32) + b1_ref[...]
        h = jnp.maximum(h, 0.0)
        x2 = jnp.dot(h.astype(jnp.bfloat16), w2_ref[...],
                     preferred_element_type=jnp.float32) + b2
        out_ref[...] = layernorm(x + x2, g2, be2)            # dropout2 = id

    return kernel


# ----------------------------------------------------------------------------
# Plain-JAX glue: gcn_norm (with self loops), Theta-fold, lane-dense padding
# ----------------------------------------------------------------------------
def _gcn_norm_adj(src, dst, keep, num_nodes):
    """Dense D^{-1/2}(A+I)D^{-1/2}; A[i, j] = 1 for kept edge j -> i."""
    w = keep.astype(jnp.float32)
    a = jnp.zeros((num_nodes, num_nodes), jnp.float32).at[dst, src].add(w)
    a = a + jnp.eye(num_nodes, dtype=jnp.float32)           # add_self_loops
    deg = jnp.sum(a, axis=1)
    dinv = jnp.where(deg > 0, lax.rsqrt(deg), 0.0)
    return a * dinv[:, None] * dinv[None, :]


def _prepare(params, x, a_f, a_b):
    n, d = x.shape
    f = params["w1"].shape[1]
    np_ = _round_up(max(n, 8), 128)      # lane-dense contraction for A @ Z
    dp = _round_up(d, 128)
    fp = _round_up(f, 128)

    # Fold Theta / GCN biases into the combining linear (exact rewrite).
    m_f = params["th_f"] @ params["wf"]
    m_b = params["th_b"] @ params["wb"]
    gcn_bias = (params["bth_f"] @ params["wf"]
                + params["bth_b"] @ params["wb"] + params["wbias"])   # [1, D]

    def pad2(a, r, c):
        return jnp.pad(a, ((0, r - a.shape[0]), (0, c - a.shape[1])))

    x_p = pad2(x, np_, dp)
    a_f_p = pad2(a_f, np_, np_).astype(jnp.bfloat16)
    a_b_p = pad2(a_b, np_, np_).astype(jnp.bfloat16)
    mcat = jnp.concatenate([pad2(m_f, dp, dp), pad2(m_b, dp, dp)],
                           axis=1).astype(jnp.bfloat16)               # [Dp,2Dp]
    w1 = pad2(params["w1"], dp, fp).astype(jnp.bfloat16)
    w2 = pad2(params["w2"], fp, dp).astype(jnp.bfloat16)
    b1 = pad2(params["b1"], 1, fp)                                    # f32

    def padv(v):
        return jnp.pad(v.reshape(-1), (0, dp - d))

    zeros = jnp.zeros((dp,), jnp.float32)
    pvec = jnp.stack([padv(gcn_bias), padv(params["b2"]),
                      padv(params["g1"]), padv(params["be1"]),
                      padv(params["g2"]), padv(params["be2"]),
                      zeros, zeros])                                  # (8, Dp)

    return (x_p, a_f_p, a_b_p, mcat, w1, w2, b1, pvec), (np_, dp, fp)


@functools.partial(jax.jit, static_argnames=("num_layers",))
def lattice_encoder_forward(x, edges, params, num_layers):
    """num_layers x LatticeEncoderLayer on node features x [N, D]."""
    n, d = x.shape
    src, dst = edges[0], edges[1]
    a_f = _gcn_norm_adj(src, dst, src < dst, n)   # forward edges  (src < dst)
    a_b = _gcn_norm_adj(src, dst, src > dst, n)   # backward edges (src > dst)

    args, (np_, dp, fp) = _prepare(params, x, a_f, a_b)

    in_specs = [pl.BlockSpec(tuple(a.shape), lambda l: (0, 0)) for a in args]
    out_spec = pl.BlockSpec((np_, dp), lambda l: (0, 0))

    resident = sum(int(a.size) * a.dtype.itemsize for a in args) + np_ * dp * 4
    # Explicit VMEM budget (sized so v7x's 64 MiB physical VMEM is respected).
    vmem_limit = min(int(resident * 2) + (8 << 20), 60 << 20)

    flops = num_layers * 2 * (np_ * dp * 2 * dp        # x @ [M_f | M_b]
                              + 2 * np_ * np_ * dp     # two A @ Z matmuls
                              + 2 * np_ * dp * fp)     # feed-forward
    cost = pl.CostEstimate(flops=flops, transcendentals=0,
                           bytes_accessed=resident + np_ * dp * 4)

    out = pl.pallas_call(
        _make_kernel(d, dp),
        out_shape=jax.ShapeDtypeStruct((np_, dp), jnp.float32),
        grid_spec=pltpu.PrefetchScalarGridSpec(
            num_scalar_prefetch=0,
            grid=(num_layers,),
            in_specs=in_specs,
            out_specs=out_spec,
        ),
        compiler_params=pltpu.CompilerParams(
            dimension_semantics=("arbitrary",),        # layers are sequential
            vmem_limit_bytes=vmem_limit,
        ),
        cost_estimate=cost,
    )(*args)
    return out[:n, :d]


# ----------------------------------------------------------------------------
# Deterministic parameter construction (synthetic; shapes per module __init__)
# ----------------------------------------------------------------------------
def init_params(key, d_model, dim_ff):
    ks = jax.random.split(key, 8)
    s = 0.05
    return {
        # GCNConv forward-direction: Theta [D, D], bias [1, D]
        "th_f": jax.random.normal(ks[0], (d_model, d_model), jnp.float32) * s,
        "bth_f": jnp.zeros((1, d_model), jnp.float32),
        # GCNConv backward-direction
        "th_b": jax.random.normal(ks[1], (d_model, d_model), jnp.float32) * s,
        "bth_b": jnp.zeros((1, d_model), jnp.float32),
        # combining linear W: [2D, D] split into the two halves
        "wf": jax.random.normal(ks[2], (d_model, d_model), jnp.float32) * s,
        "wb": jax.random.normal(ks[3], (d_model, d_model), jnp.float32) * s,
        "wbias": jax.random.normal(ks[4], (1, d_model), jnp.float32) * s,
        # feed-forward
        "w1": jax.random.normal(ks[5], (d_model, dim_ff), jnp.float32) * s,
        "b1": jax.random.normal(ks[6], (1, dim_ff), jnp.float32) * s,
        "w2": jax.random.normal(ks[7], (dim_ff, d_model), jnp.float32) * s,
        "b2": jnp.zeros((1, d_model), jnp.float32),
        # LayerNorms
        "g1": jnp.ones((1, d_model), jnp.float32),
        "be1": jnp.zeros((1, d_model), jnp.float32),
        "g2": jnp.ones((1, d_model), jnp.float32),
        "be2": jnp.zeros((1, d_model), jnp.float32),
    }


if __name__ == "__main__":
    N_NODES = 16       # total nodes in the (single-graph) lattice batch
    EMBED = 32         # embed_size == d_model
    HIDDEN = 64        # hidden_size == dim_feedforward
    NUM_LAYERS = 2     # all layers share params (_get_clones of one layer)
    # num_heads / dropout are irrelevant for gnn_type='gcn' in eval mode.

    key = jax.random.PRNGKey(0)
    k_x, k_p = jax.random.split(key)

    # lat.x : node embeddings [num_total_nodes, embed_size]
    x = jax.random.normal(k_x, (N_NODES, EMBED), jnp.float32)

    # lattice edge_index [2, E]: chain + skip edges, both directions present
    fwd_pairs = [(i, i + 1) for i in range(N_NODES - 1)] + \
                [(i, i + 2) for i in range(N_NODES - 2)]
    bwd_pairs = [(j, i) for (i, j) in fwd_pairs]
    edges = jnp.asarray(fwd_pairs + bwd_pairs, dtype=jnp.int32).T  # [2, E]

    params = init_params(k_p, EMBED, HIDDEN)

    out = lattice_encoder_forward(x, edges, params, NUM_LAYERS)
    jax.block_until_ready(out)
    assert out.shape == (N_NODES, EMBED)
    assert bool(jnp.all(jnp.isfinite(out)))
    print("KERNEL_OK")
</pallas_src>

<mosaic_0001>
module attributes {stable_mosaic.version = 11 : i64} {
  func.func @kernel(%arg0: i32, %arg1: memref<128x128xf32, #tpu.memory_space<vmem>>, %arg2: memref<128x128xbf16, #tpu.memory_space<vmem>>, %arg3: memref<128x128xbf16, #tpu.memory_space<vmem>>, %arg4: memref<128x256xbf16, #tpu.memory_space<vmem>>, %arg5: memref<128x128xbf16, #tpu.memory_space<vmem>>, %arg6: memref<128x128xbf16, #tpu.memory_space<vmem>>, %arg7: memref<1x128xf32, #tpu.memory_space<vmem>>, %arg8: memref<8x128xf32, #tpu.memory_space<vmem>>, %arg9: memref<128x128xf32, #tpu.memory_space<vmem>>) attributes {dimension_semantics = [#tpu.dimension_semantics<arbitrary>], iteration_bounds = array<i64: 2>, scalar_prefetch = 0 : i64, scratch_operands = 0 : i64, tpu.core_type = #tpu.core_type<tc>, window_params = [{pipeline_mode = #tpu.pipeline_mode<synchronous>, transform_indices = @transform_0, window_bounds = array<i64: 128, 128>}, {pipeline_mode = #tpu.pipeline_mode<synchronous>, transform_indices = @transform_1, window_bounds = array<i64: 128, 128>}, {pipeline_mode = #tpu.pipeline_mode<synchronous>, transform_indices = @transform_2, window_bounds = array<i64: 128, 128>}, {pipeline_mode = #tpu.pipeline_mode<synchronous>, transform_indices = @transform_3, window_bounds = array<i64: 128, 256>}, {pipeline_mode = #tpu.pipeline_mode<synchronous>, transform_indices = @transform_4, window_bounds = array<i64: 128, 128>}, {pipeline_mode = #tpu.pipeline_mode<synchronous>, transform_indices = @transform_5, window_bounds = array<i64: 128, 128>}, {pipeline_mode = #tpu.pipeline_mode<synchronous>, transform_indices = @transform_6, window_bounds = array<i64: 1, 128>}, {pipeline_mode = #tpu.pipeline_mode<synchronous>, transform_indices = @transform_7, window_bounds = array<i64: 8, 128>}, {pipeline_mode = #tpu.pipeline_mode<synchronous>, transform_indices = @transform_8, window_bounds = array<i64: 128, 128>}]} {
    %c0_i32 = arith.constant 0 : i32
    %0 = arith.cmpi eq, %arg0, %c0_i32 : i32
    %1 = arith.extui %0 : i1 to i32
    %c0_i32_0 = arith.constant 0 : i32
    %2 = arith.cmpi ne, %1, %c0_i32_0 : i32
    scf.if %2 {
      %c0_36 = arith.constant 0 : index
      %c0_37 = arith.constant 0 : index
      %90 = vector.load %arg1[%c0_36, %c0_37] : memref<128x128xf32, #tpu.memory_space<vmem>>, vector<128x128xf32>
      %c0_38 = arith.constant 0 : index
      %c0_39 = arith.constant 0 : index
      %91 = vector.load %arg9[%c0_38, %c0_39] : memref<128x128xf32, #tpu.memory_space<vmem>>, vector<128x128xf32>
      tpu.vector_store %arg9[%c0_38, %c0_39], %90 {strides = array<i32>} : memref<128x128xf32, #tpu.memory_space<vmem>>, vector<128x128xf32>,
    } else {
    }
    %c0 = arith.constant 0 : index
    %c0_1 = arith.constant 0 : index
    %3 = vector.load %arg9[%c0, %c0_1] : memref<128x128xf32, #tpu.memory_space<vmem>>, vector<128x128xf32>
    %c0_2 = arith.constant 0 : index
    %c0_3 = arith.constant 0 : index
    %4 = vector.load %arg8[%c0_2, %c0_3] : memref<8x128xf32, #tpu.memory_space<vmem>>, vector<8x128xf32>
    %5 = vector.extract_strided_slice %4 {offsets = [0, 0], sizes = [1, 128], strides = [1, 1]} : vector<8x128xf32> to vector<1x128xf32>
    %6 = vector.extract_strided_slice %4 {offsets = [1, 0], sizes = [1, 128], strides = [1, 1]} : vector<8x128xf32> to vector<1x128xf32>
    %7 = vector.extract_strided_slice %4 {offsets = [2, 0], sizes = [1, 128], strides = [1, 1]} : vector<8x128xf32> to vector<1x128xf32>
    %8 = vector.extract_strided_slice %4 {offsets = [3, 0], sizes = [1, 128], strides = [1, 1]} : vector<8x128xf32> to vector<1x128xf32>
    %9 = vector.extract_strided_slice %4 {offsets = [4, 0], sizes = [1, 128], strides = [1, 1]} : vector<8x128xf32> to vector<1x128xf32>
    %10 = vector.extract_strided_slice %4 {offsets = [5, 0], sizes = [1, 128], strides = [1, 1]} : vector<8x128xf32> to vector<1x128xf32>
    %11 = arith.truncf %3 : vector<128x128xf32> to vector<128x128xbf16>
    %c0_4 = arith.constant 0 : index
    %c0_5 = arith.constant 0 : index
    %12 = vector.load %arg4[%c0_4, %c0_5] : memref<128x256xbf16, #tpu.memory_space<vmem>>, vector<128x256xbf16>
    %cst = arith.constant dense<0.000000e+00> : vector<128x256xf32>
    %13 = tpu.matmul %11, %12, %cst {dimension_numbers = #tpu.dot_dimension_numbers<[1], [0], [0], [1], [0, 0, 1, 1], [], []>} : vector<128x128xbf16>, vector<128x256xbf16>, vector<128x256xf32> -> vector<128x256xf32>
    %14 = arith.truncf %13 : vector<128x256xf32> to vector<128x256xbf16>
    %c0_6 = arith.constant 0 : index
    %c0_7 = arith.constant 0 : index
    %15 = vector.load %arg2[%c0_6, %c0_7] : memref<128x128xbf16, #tpu.memory_space<vmem>>, vector<128x128xbf16>
    %16 = vector.extract_strided_slice %14 {offsets = [0, 0], sizes = [128, 128], strides = [1, 1]} : vector<128x256xbf16> to vector<128x128xbf16>
    %cst_8 = arith.constant dense<0.000000e+00> : vector<128x128xf32>
    %17 = tpu.matmul %15, %16, %cst_8 {dimension_numbers = #tpu.dot_dimension_numbers<[1], [0], [0], [1], [0, 0, 1, 1], [], []>} : vector<128x128xbf16>, vector<128x128xbf16>, vector<128x128xf32> -> vector<128x128xf32>
    %c0_9 = arith.constant 0 : index
    %c0_10 = arith.constant 0 : index
    %18 = vector.load %arg3[%c0_9, %c0_10] : memref<128x128xbf16, #tpu.memory_space<vmem>>, vector<128x128xbf16>
    %19 = vector.extract_strided_slice %14 {offsets = [0, 128], sizes = [128, 128], strides = [1, 1]} : vector<128x256xbf16> to vector<128x128xbf16>
    %cst_11 = arith.constant dense<0.000000e+00> : vector<128x128xf32>
    %20 = tpu.matmul %18, %19, %cst_11 {dimension_numbers = #tpu.dot_dimension_numbers<[1], [0], [0], [1], [0, 0, 1, 1], [], []>} : vector<128x128xbf16>, vector<128x128xbf16>, vector<128x128xf32> -> vector<128x128xf32>
    %21 = arith.addf %17, %20 : vector<128x128xf32>
    %22 = arith.addf %3, %21 : vector<128x128xf32>
    %23 = vector.broadcast %5 : vector<1x128xf32> to vector<128x128xf32>
    %24 = arith.addf %22, %23 : vector<128x128xf32>
    %cst_12 = arith.constant dense<0.000000e+00> : vector<128xf32>
    %25 = vector.multi_reduction <add>, %24, %cst_12 [1] : vector<128x128xf32> to vector<128xf32>
    %26 = vector.shape_cast %25 : vector<128xf32> to vector<128x1xf32>
    %cst_13 = arith.constant 3.125000e-02 : f32
    %27 = vector.broadcast %cst_13 : f32 to vector<128x1xf32>
    %28 = arith.mulf %26, %27 : vector<128x1xf32>
    %29 = tpu.iota {dimensions = array<i32: 1>} : vector<128x128xi32>
    %c32_i32 = arith.constant 32 : i32
    %30 = vector.broadcast %c32_i32 : i32 to vector<128x128xi32>
    %31 = arith.cmpi slt, %29, %30 : vector<128x128xi32>
    %32 = vector.broadcast %28 : vector<128x1xf32> to vector<128x128xf32>
    %33 = arith.subf %24, %32 : vector<128x128xf32>
    %cst_14 = arith.constant 0.000000e+00 : f32
    %34 = vector.broadcast %cst_14 : f32 to vector<128x128xf32>
    %35 = arith.select %31, %33, %34 : vector<128x128xi1>, vector<128x128xf32>
    %36 = arith.mulf %35, %35 : vector<128x128xf32>
    %cst_15 = arith.constant dense<0.000000e+00> : vector<128xf32>
    %37 = vector.multi_reduction <add>, %36, %cst_15 [1] : vector<128x128xf32> to vector<128xf32>
    %38 = vector.shape_cast %37 : vector<128xf32> to vector<128x1xf32>
    %cst_16 = arith.constant 3.125000e-02 : f32
    %39 = vector.broadcast %cst_16 : f32 to vector<128x1xf32>
    %40 = arith.mulf %38, %39 : vector<128x1xf32>
    %cst_17 = arith.constant 9.99999974E-6 : f32
    %41 = vector.broadcast %cst_17 : f32 to vector<128x1xf32>
    %42 = arith.addf %40, %41 : vector<128x1xf32>
    %43 = math.rsqrt %42 : vector<128x1xf32>
    %44 = vector.broadcast %43 : vector<128x1xf32> to vector<128x128xf32>
    %45 = arith.mulf %35, %44 : vector<128x128xf32>
    %46 = vector.broadcast %7 : vector<1x128xf32> to vector<128x128xf32>
    %47 = arith.mulf %45, %46 : vector<128x128xf32>
    %48 = vector.broadcast %8 : vector<1x128xf32> to vector<128x128xf32>
    %49 = arith.addf %47, %48 : vector<128x128xf32>
    %50 = arith.truncf %49 : vector<128x128xf32> to vector<128x128xbf16>
    %c0_18 = arith.constant 0 : index
    %c0_19 = arith.constant 0 : index
    %51 = vector.load %arg5[%c0_18, %c0_19] : memref<128x128xbf16, #tpu.memory_space<vmem>>, vector<128x128xbf16>
    %cst_20 = arith.constant dense<0.000000e+00> : vector<128x128xf32>
    %52 = tpu.matmul %50, %51, %cst_20 {dimension_numbers = #tpu.dot_dimension_numbers<[1], [0], [0], [1], [0, 0, 1, 1], [], []>} : vector<128x128xbf16>, vector<128x128xbf16>, vector<128x128xf32> -> vector<128x128xf32>
    %c0_21 = arith.constant 0 : index
    %c0_22 = arith.constant 0 : index
    %53 = vector.load %arg7[%c0_21, %c0_22] : memref<1x128xf32, #tpu.memory_space<vmem>>, vector<1x128xf32>
    %54 = vector.broadcast %53 : vector<1x128xf32> to vector<128x128xf32>
    %55 = arith.addf %52, %54 : vector<128x128xf32>
    %cst_23 = arith.constant 0.000000e+00 : f32
    %56 = vector.broadcast %cst_23 : f32 to vector<128x128xf32>
    %57 = arith.maximumf %55, %56 : vector<128x128xf32>
    %58 = arith.truncf %57 : vector<128x128xf32> to vector<128x128xbf16>
    %c0_24 = arith.constant 0 : index
    %c0_25 = arith.constant 0 : index
    %59 = vector.load %arg6[%c0_24, %c0_25] : memref<128x128xbf16, #tpu.memory_space<vmem>>, vector<128x128xbf16>
    %cst_26 = arith.constant dense<0.000000e+00> : vector<128x128xf32>
    %60 = tpu.matmul %58, %59, %cst_26 {dimension_numbers = #tpu.dot_dimension_numbers<[1], [0], [0], [1], [0, 0, 1, 1], [], []>} : vector<128x128xbf16>, vector<128x128xbf16>, vector<128x128xf32> -> vector<128x128xf32>
    %61 = vector.broadcast %6 : vector<1x128xf32> to vector<128x128xf32>
    %62 = arith.addf %60, %61 : vector<128x128xf32>
    %63 = arith.addf %49, %62 : vector<128x128xf32>
    %cst_27 = arith.constant dense<0.000000e+00> : vector<128xf32>
    %64 = vector.multi_reduction <add>, %63, %cst_27 [1] : vector<128x128xf32> to vector<128xf32>
    %65 = vector.shape_cast %64 : vector<128xf32> to vector<128x1xf32>
    %cst_28 = arith.constant 3.125000e-02 : f32
    %66 = vector.broadcast %cst_28 : f32 to vector<128x1xf32>
    %67 = arith.mulf %65, %66 : vector<128x1xf32>
    %68 = tpu.iota {dimensions = array<i32: 1>} : vector<128x128xi32>
    %c32_i32_29 = arith.constant 32 : i32
    %69 = vector.broadcast %c32_i32_29 : i32 to vector<128x128xi32>
    %70 = arith.cmpi slt, %68, %69 : vector<128x128xi32>
    %71 = vector.broadcast %67 : vector<128x1xf32> to vector<128x128xf32>
    %72 = arith.subf %63, %71 : vector<128x128xf32>
    %cst_30 = arith.constant 0.000000e+00 : f32
    %73 = vector.broadcast %cst_30 : f32 to vector<128x128xf32>
    %74 = arith.select %70, %72, %73 : vector<128x128xi1>, vector<128x128xf32>
    %75 = arith.mulf %74, %74 : vector<128x128xf32>
    %cst_31 = arith.constant dense<0.000000e+00> : vector<128xf32>
    %76 = vector.multi_reduction <add>, %75, %cst_31 [1] : vector<128x128xf32> to vector<128xf32>
    %77 = vector.shape_cast %76 : vector<128xf32> to vector<128x1xf32>
    %cst_32 = arith.constant 3.125000e-02 : f32
    %78 = vector.broadcast %cst_32 : f32 to vector<128x1xf32>
    %79 = arith.mulf %77, %78 : vector<128x1xf32>
    %cst_33 = arith.constant 9.99999974E-6 : f32
    %80 = vector.broadcast %cst_33 : f32 to vector<128x1xf32>
    %81 = arith.addf %79, %80 : vector<128x1xf32>
    %82 = math.rsqrt %81 : vector<128x1xf32>
    %83 = vector.broadcast %82 : vector<128x1xf32> to vector<128x128xf32>
    %84 = arith.mulf %74, %83 : vector<128x128xf32>
    %85 = vector.broadcast %9 : vector<1x128xf32> to vector<128x128xf32>
    %86 = arith.mulf %84, %85 : vector<128x128xf32>
    %87 = vector.broadcast %10 : vector<1x128xf32> to vector<128x128xf32>
    %88 = arith.addf %86, %87 : vector<128x128xf32>
    %c0_34 = arith.constant 0 : index
    %c0_35 = arith.constant 0 : index
    %89 = vector.load %arg9[%c0_34, %c0_35] : memref<128x128xf32, #tpu.memory_space<vmem>>, vector<128x128xf32>
    tpu.vector_store %arg9[%c0_34, %c0_35], %88 {strides = array<i32>} : memref<128x128xf32, #tpu.memory_space<vmem>>, vector<128x128xf32>,
    return
  }
  func.func @transform_0(%arg0: i32) -> (i32, i32) {
    %c0_i32 = arith.constant 0 : i32
    %c0_i32_0 = arith.constant 0 : i32
    %c0_i32_1 = arith.constant 0 : i32
    return %c0_i32, %c0_i32_0 : i32, i32
  }
  func.func @transform_1(%arg0: i32) -> (i32, i32) {
    %c0_i32 = arith.constant 0 : i32
    %c0_i32_0 = arith.constant 0 : i32
    %c0_i32_1 = arith.constant 0 : i32
    return %c0_i32, %c0_i32_0 : i32, i32
  }
  func.func @transform_2(%arg0: i32) -> (i32, i32) {
    %c0_i32 = arith.constant 0 : i32
    %c0_i32_0 = arith.constant 0 : i32
    %c0_i32_1 = arith.constant 0 : i32
    return %c0_i32, %c0_i32_0 : i32, i32
  }
  func.func @transform_3(%arg0: i32) -> (i32, i32) {
    %c0_i32 = arith.constant 0 : i32
    %c0_i32_0 = arith.constant 0 : i32
    %c0_i32_1 = arith.constant 0 : i32
    return %c0_i32, %c0_i32_0 : i32, i32
  }
  func.func @transform_4(%arg0: i32) -> (i32, i32) {
    %c0_i32 = arith.constant 0 : i32
    %c0_i32_0 = arith.constant 0 : i32
    %c0_i32_1 = arith.constant 0 : i32
    return %c0_i32, %c0_i32_0 : i32, i32
  }
  func.func @transform_5(%arg0: i32) -> (i32, i32) {
    %c0_i32 = arith.constant 0 : i32
    %c0_i32_0 = arith.constant 0 : i32
    %c0_i32_1 = arith.constant 0 : i32
    return %c0_i32, %c0_i32_0 : i32, i32
  }
  func.func @transform_6(%arg0: i32) -> (i32, i32) {
    %c0_i32 = arith.constant 0 : i32
    %c0_i32_0 = arith.constant 0 : i32
    %c0_i32_1 = arith.constant 0 : i32
    return %c0_i32, %c0_i32_0 : i32, i32
  }
  func.func @transform_7(%arg0: i32) -> (i32, i32) {
    %c0_i32 = arith.constant 0 : i32
    %c0_i32_0 = arith.constant 0 : i32
    %c0_i32_1 = arith.constant 0 : i32
    return %c0_i32, %c0_i32_0 : i32, i32
  }
  func.func @transform_8(%arg0: i32) -> (i32, i32) {
    %c0_i32 = arith.constant 0 : i32
    %c0_i32_0 = arith.constant 0 : i32
    %c0_i32_1 = arith.constant 0 : i32
    return %c0_i32, %c0_i32_0 : i32, i32
  }
}

</mosaic_0001>

<bundles_post_ra>
// kernel: lattice_encoder_forward.1
= control target key start
LH: loop header
LB: loop body
LE: loop exit
PB: predicated region body
PF: predicated region fallthrough
CT: control target
= control target key end

     0   :  { %s2243_s27 = smov 0   ;;  %s3200_s0 = inlined_call_operand.vmem [shape: f32[128,128], index: 0, kind: input, shape index: {}]   ;;  %s3201_s1 = inlined_call_operand.vmem [shape: bf16[128,128], index: 1, kind: input, shape index: {}]   ;;  %s3202_s2 = inlined_call_operand.vmem [shape: bf16[128,128], index: 2, kind: input, shape index: {}]   ;;  %s3203_s3 = inlined_call_operand.vmem [shape: bf16[128,256], index: 3, kind: input, shape index: {}]   ;;  %s3204_s4 = inlined_call_operand.vmem [shape: bf16[128,128], index: 4, kind: input, shape index: {}]   ;;  %s3205_s5 = inlined_call_operand.vmem [shape: bf16[128,128], index: 5, kind: input, shape index: {}]   ;;  %s3206_s6 = inlined_call_operand.vmem [shape: f32[1,128], index: 6, kind: input, shape index: {}]   ;;  %s3207_s7 = inlined_call_operand.vmem [shape: f32[8,128], index: 7, kind: input, shape index: {}]   ;;  %s3208_s8 = inlined_call_operand.vmem [shape: f32[128,128], index: 8, kind: output, shape index: {}]  }
   0x1 LB: > { %s1796_s28 = sadd.s32 4294967295, %s2195_s27   ;;  %p1798_p0 = scmp.ge.s32.totalorder %s2195_s27, 1  ;;  %s2195_s27 = sphi %s2243_s27, %s18_s27  }
   0x2   : > { %p247_p1 = scmp.lt.s32.totalorder %s2195_s27, 3 }
   0x4   : > { %p248_p2 = pnand %p1798_p0, %p247_p1 }
   0x5   : > { %p1799_p3 = scmp.ne.s32.totalorder (!%p248_p2), %s1796_s28, 0 }
   0x6   : > { %251 = sbr.rel (%p248_p2) target bundleno = 1686 (0x696), region = 52 }
   0xd   : > { %275 = sbr.rel (%p1799_p3) target bundleno = 22 (0x16), region = 56  ;;  %v276_v0 = vld [vmem:[%s3200_s0] sm:$0xff] (!%p1799_p3)  ;;  %v277_v1 = vld [vmem:[%s3200_s0 + $0x8] sm:$0xff] (!%p1799_p3)  ;;  %v278_v2 = vld [vmem:[%s3200_s0 + $0x10] sm:$0xff] (!%p1799_p3) }
   0xe   : > { %292 = vst [vmem:[%s3208_s8] sm:$0xff] (!%p1799_p3), %v276_v0  ;;  %293 = vst [vmem:[%s3208_s8 + $0x8] sm:$0xff] (!%p1799_p3), %v277_v1  ;;  %v279_v3 = vld [vmem:[%s3200_s0 + $0x18] sm:$0xff] (!%p1799_p3)  ;;  %v280_v4 = vld [vmem:[%s3200_s0 + $0x20] sm:$0xff] (!%p1799_p3) }
   0xf   : > { %294 = vst [vmem:[%s3208_s8 + $0x10] sm:$0xff] (!%p1799_p3), %v278_v2  ;;  %v281_v5 = vld [vmem:[%s3200_s0 + $0x28] sm:$0xff] (!%p1799_p3)  ;;  %295 = vst [vmem:[%s3208_s8 + $0x18] sm:$0xff] (!%p1799_p3), %v279_v3  ;;  %v282_v6 = vld [vmem:[%s3200_s0 + $0x30] sm:$0xff] (!%p1799_p3) }
  0x10   : > { %296 = vst [vmem:[%s3208_s8 + $0x20] sm:$0xff] (!%p1799_p3), %v280_v4  ;;  %297 = vst [vmem:[%s3208_s8 + $0x28] sm:$0xff] (!%p1799_p3), %v281_v5  ;;  %v283_v7 = vld [vmem:[%s3200_s0 + $0x38] sm:$0xff] (!%p1799_p3)  ;;  %v284_v8 = vld [vmem:[%s3200_s0 + $0x40] sm:$0xff] (!%p1799_p3) }
  0x11   : > { %298 = vst [vmem:[%s3208_s8 + $0x30] sm:$0xff] (!%p1799_p3), %v282_v6  ;;  %299 = vst [vmem:[%s3208_s8 + $0x38] sm:$0xff] (!%p1799_p3), %v283_v7  ;;  %v285_v9 = vld [vmem:[%s3200_s0 + $0x48] sm:$0xff] (!%p1799_p3)  ;;  %v286_v10 = vld [vmem:[%s3200_s0 + $0x50] sm:$0xff] (!%p1799_p3) }
  0x12   : > { %300 = vst [vmem:[%s3208_s8 + $0x40] sm:$0xff] (!%p1799_p3), %v284_v8  ;;  %v287_v11 = vld [vmem:[%s3200_s0 + $0x58] sm:$0xff] (!%p1799_p3)  ;;  %301 = vst [vmem:[%s3208_s8 + $0x48] sm:$0xff] (!%p1799_p3), %v285_v9  ;;  %v288_v12 = vld [vmem:[%s3200_s0 + $0x60] sm:$0xff] (!%p1799_p3) }
  0x13   : > { %302 = vst [vmem:[%s3208_s8 + $0x50] sm:$0xff] (!%p1799_p3), %v286_v10  ;;  %303 = vst [vmem:[%s3208_s8 + $0x58] sm:$0xff] (!%p1799_p3), %v287_v11  ;;  %v289_v13 = vld [vmem:[%s3200_s0 + $0x68] sm:$0xff] (!%p1799_p3)  ;;  %v290_v14 = vld [vmem:[%s3200_s0 + $0x70] sm:$0xff] (!%p1799_p3) }
  0x14   : > { %304 = vst [vmem:[%s3208_s8 + $0x60] sm:$0xff] %v288_v12  ;;  %305 = vst [vmem:[%s3208_s8 + $0x68] sm:$0xff] %v289_v13  ;;  %v291_v15 = vld [vmem:[%s3200_s0 + $0x78] sm:$0xff] }
  0x15   : > { %306 = vst [vmem:[%s3208_s8 + $0x70] sm:$0xff] %v290_v14  ;;  %307 = vst [vmem:[%s3208_s8 + $0x78] sm:$0xff] %v291_v15 }
  0x16 PF: > { %v2068_v16 = vld [vmem:[%s3203_s3 + $0x4] ss:$8 sps:$4 sm:$0xff]   ;;  %v2070_v17 = vld [vmem:[%s3203_s3] ss:$8 sps:$4 sm:$0xff]   ;;  %v2197_v18 = vmov 0  }
  0x17   : > { %461 = vmatprep.mubr.bf16.mxu0 %v2197_v18  ;;  %429 = vmatprep.subr.bf16.mxu0 %v2068_v16  ;;  %v2071_v19 = vld [vmem:[%s3203_s3 + $0x14] ss:$8 sps:$4 sm:$0xff]   ;;  %v2073_v20 = vld [vmem:[%s3203_s3 + $0x10] ss:$8 sps:$4 sm:$0xff]   ;;  %v2074_v21 = vld [vmem:[%s3203_s3 + $0x24] ss:$8 sps:$4 sm:$0xff]  }
  0x18   : > { %430 = vmatpush1.bf16.msra.mxu0 %v2070_v17  ;;  %v2076_v22 = vld [vmem:[%s3203_s3 + $0x20] ss:$8 sps:$4 sm:$0xff]   ;;  %v2077_v23 = vld [vmem:[%s3203_s3 + $0x34] ss:$8 sps:$4 sm:$0xff]   ;;  %v2079_v24 = vld [vmem:[%s3203_s3 + $0x30] ss:$8 sps:$4 sm:$0xff]  }
  0x19   : > { %431 = vmatprep.subr.bf16.mxu0 %v2071_v19  ;;  %v2080_v25 = vld [vmem:[%s3203_s3 + $0x44] ss:$8 sps:$4 sm:$0xff]   ;;  %v2082_v26 = vld [vmem:[%s3203_s3 + $0x40] ss:$8 sps:$4 sm:$0xff]   ;;  %v2083_v27 = vld [vmem:[%s3203_s3 + $0x54] ss:$8 sps:$4 sm:$0xff]  }
  0x1a   : > { %v2085_v28 = vld [vmem:[%s3203_s3 + $0x50] ss:$8 sps:$4 sm:$0xff]   ;;  %v2086_v29 = vld [vmem:[%s3203_s3 + $0x64] ss:$8 sps:$4 sm:$0xff]   ;;  %v2088_v30 = vld [vmem:[%s3203_s3 + $0x60] ss:$8 sps:$4 sm:$0xff]  }
  0x1b   : > { %v2089_v31 = vld [vmem:[%s3203_s3 + $0x74] ss:$8 sps:$4 sm:$0xff]   ;;  %v2091_v32 = vld [vmem:[%s3203_s3 + $0x70] ss:$8 sps:$4 sm:$0xff]   ;;  %v2399_v33 = vld [vmem:[%s3208_s8] sm:$0xff] }
  0x1c   : > { %432 = vmatpush1.bf16.msra.mxu0 %v2073_v20  ;;  %v2404_v34 = vld [vmem:[%s3208_s8 + $0x8] sm:$0xff]  ;;  %v2411_v36 = vld [vmem:[%s3208_s8 + $0x10] sm:$0xff]  ;;  %v2416_v37 = vld [vmem:[%s3208_s8 + $0x18] sm:$0xff] }
  0x1d   : > { %433 = vmatprep.subr.bf16.mxu0 %v2074_v21  ;;  %v325_v35 = vpack.c.bf16 %v2404_v34, %v2399_v33  ;;  %v326_v38 = vpack.c.bf16 %v2416_v37, %v2411_v36  ;;  %v2425_v39 = vld [vmem:[%s3208_s8 + $0x20] sm:$0xff]  ;;  %v2430_v40 = vld [vmem:[%s3208_s8 + $0x28] sm:$0xff]  ;;  %v2438_v42 = vld [vmem:[%s3208_s8 + $0x30] sm:$0xff] }
  0x1e   : > { %v327_v41 = vpack.c.bf16 %v2430_v40, %v2425_v39  ;;  %v2443_v43 = vld [vmem:[%s3208_s8 + $0x38] sm:$0xff]  ;;  %v2451_v45 = vld [vmem:[%s3208_s8 + $0x40] sm:$0xff]  ;;  %v2456_v46 = vld [vmem:[%s3208_s8 + $0x48] sm:$0xff] }
  0x1f   : > { %v328_v44 = vpack.c.bf16 %v2443_v43, %v2438_v42  ;;  %v329_v47 = vpack.c.bf16 %v2456_v46, %v2451_v45  ;;  %v2464_v48 = vld [vmem:[%s3208_s8 + $0x50] sm:$0xff]  ;;  %v2469_v49 = vld [vmem:[%s3208_s8 + $0x58] sm:$0xff]  ;;  %v2477_v51 = vld [vmem:[%s3208_s8 + $0x60] sm:$0xff] }
  0x20   : > { %434 = vmatpush1.bf16.msra.mxu0 %v2076_v22  ;;  %v330_v50 = vpack.c.bf16 %v2469_v49, %v2464_v48  ;;  %v2482_v52 = vld [vmem:[%s3208_s8 + $0x68] sm:$0xff]  ;;  %v2490_v54 = vld [vmem:[%s3208_s8 + $0x70] sm:$0xff]  ;;  %v2495_v55 = vld [vmem:[%s3208_s8 + $0x78] sm:$0xff] }
  0x21   : > { %435 = vmatprep.subr.bf16.mxu0 %v2077_v23  ;;  %v331_v53 = vpack.c.bf16 %v2482_v52, %v2477_v51  ;;  %v332_v56 = vpack.c.bf16 %v2495_v55, %v2490_v54  ;;  %v2092_v57 = vld [vmem:[%s3202_s2] sm:$0xff]  }
  0x22   : > { %1931 = vmatprep.mubr.bf16.mxu1 %v2092_v57 }
  0x24   : > { %436 = vmatpush1.bf16.msra.mxu0 %v2079_v24 }
  0x25   : > { %437 = vmatprep.subr.bf16.mxu0 %v2080_v25 }
  0x28   : > { %438 = vmatpush1.bf16.msra.mxu0 %v2082_v26 }
  0x29   : > { %439 = vmatprep.subr.bf16.mxu0 %v2083_v27 }
  0x2c   : > { %440 = vmatpush1.bf16.msra.mxu0 %v2085_v28 }
  0x2d   : > { %441 = vmatprep.subr.bf16.mxu0 %v2086_v29 }
  0x30   : > { %442 = vmatpush1.bf16.msra.mxu0 %v2088_v30 }
  0x31   : > { %443 = vmatprep.subr.bf16.mxu0 %v2089_v31 }
  0x34   : > { %444 = vmatpush1.bf16.msra.mxu0 %v2091_v32 }
  0x37   : > { %462 = vmatmul.mubr.bf16.vlgmr.msra.gmra.mrb[0].mxu0 %v325_v35 }
  0x38   : > { %471 = vmatprep.mubr.bf16.mxu0 %v2197_v18 }
  0x3f   : > { %472 = vmatmul.mubr.bf16.gmra.mrb[4].mxu0 %v326_v38 }
  0x40   : > { %481 = vmatprep.mubr.bf16.mxu0 %v2197_v18 }
  0x47   : > { %482 = vmatmul.mubr.bf16.gmra.mrb[8].mxu0 %v327_v41 }
  0x48   : > { %491 = vmatprep.mubr.bf16.mxu0 %v2197_v18 }
  0x4f   : > { %492 = vmatmul.mubr.bf16.gmra.mrb[12].mxu0 %v328_v44 }
  0x50   : > { %501 = vmatprep.mubr.bf16.mxu0 %v2197_v18 }
  0x57   : > { %502 = vmatmul.mubr.bf16.gmra.mrb[16].mxu0 %v329_v47 }
  0x58   : > { %511 = vmatprep.mubr.bf16.mxu0 %v2197_v18 }
  0x5f   : > { %512 = vmatmul.mubr.bf16.gmra.mrb[20].mxu0 %v330_v50 }
  0x60   : > { %521 = vmatprep.mubr.bf16.mxu0 %v2197_v18 }
  0x67   : > { %522 = vmatmul.mubr.bf16.gmra.mrb[24].mxu0 %v331_v53 }
  0x68   : > { %531 = vmatprep.mubr.bf16.mxu0 %v2197_v18 }
  0x6f   : > { %532 = vmatmul.mubr.bf16.gmra.mrb[28].mxu0 %v332_v56 }
 0x10a   : > { %v463_v58 = vpop.f32.mrb[0].mxu0 }
 0x10b   : > { %v465_v59 = vpop.f32.mrb[1].mxu0 }
 0x10c   : > { %v467_v60 = vpop.f32.mrb[2].mxu0 }
 0x10d   : > { %v2502_v61 = vpack.c.bf16 %v467_v60, %v463_v58  ;;  %v469_v62 = vpop.f32.mrb[3].mxu0  ;;  %v2093_v58 = vld [vmem:[%s3202_s2 + $0x8] sm:$0xff]   ;;  %v2095_v60 = vld [vmem:[%s3202_s2 + $0x18] sm:$0xff]  }
 0x10e   : > { %v543_v63 = vpack.c.bf16 %v469_v62, %v465_v59  ;;  %v2094_v59 = vld [vmem:[%s3202_s2 + $0x10] sm:$0xff]   ;;  %v2096_v62 = vld [vmem:[%s3202_s2 + $0x20] sm:$0xff]  }
 0x110   : > { %1915 = vmatprep.subr.bf16.mxu1 %v543_v63 }
 0x111   : > { %1916 = vmatpush3.bf16.msra.mxu1 %v543_v63  ;;  %v2098_v63 = vld [vmem:[%s3202_s2 + $0x30] sm:$0xff]  }
 0x112   : > { %v473_v0 = vpop.f32.mrb[4].mxu0 }
 0x113   : > { %v475_v1 = vpop.f32.mrb[5].mxu0 }
 0x114   : > { %v477_v2 = vpop.f32.mrb[6].mxu0 }
 0x115   : > { %v544_v3 = vpack.c.bf16 %v477_v2, %v473_v0  ;;  %v479_v4 = vpop.f32.mrb[7].mxu0  ;;  %v2099_v0 = vld [vmem:[%s3202_s2 + $0x38] sm:$0xff]   ;;  %v2101_v2 = vld [vmem:[%s3201_s1 + $0x8] sm:$0xff]  }
 0x116   : > { %v545_v5 = vpack.c.bf16 %v479_v4, %v475_v1  ;;  %v2100_v1 = vld [vmem:[%s3201_s1] sm:$0xff]   ;;  %v2103_v4 = vld [vmem:[%s3201_s1 + $0x18] sm:$0xff]  }
 0x118   : > { %1917 = vmatprep.subr.bf16.mxu1 %v545_v5 }
 0x119   : > { %1918 = vmatpush3.bf16.msra.mxu1 %v545_v5  ;;  %v2104_v5 = vld [vmem:[%s3201_s1 + $0x20] sm:$0xff]  }
 0x11a   : > { %v483_v6 = vpop.f32.mrb[8].mxu0 }
 0x11b   : > { %v485_v7 = vpop.f32.mrb[9].mxu0 }
 0x11c   : > { %v487_v8 = vpop.f32.mrb[10].mxu0 }
 0x11d   : > { %v546_v9 = vpack.c.bf16 %v487_v8, %v483_v6  ;;  %v489_v10 = vpop.f32.mrb[11].mxu0  ;;  %v2105_v6 = vld [vmem:[%s3201_s1 + $0x28] sm:$0xff]   ;;  %v2107_v8 = vld [vmem:[%s3201_s1 + $0x38] sm:$0xff]  }
 0x11e   : > { %v547_v11 = vpack.c.bf16 %v489_v10, %v485_v7  ;;  %v2106_v7 = vld [vmem:[%s3201_s1 + $0x30] sm:$0xff]  }
 0x120   : > { %1919 = vmatprep.subr.bf16.mxu1 %v547_v11 }
 0x121   : > { %1920 = vmatpush3.bf16.msra.mxu1 %v547_v11 }
 0x122   : > { %v493_v12 = vpop.f32.mrb[12].mxu0 }
 0x123   : > { %v495_v13 = vpop.f32.mrb[13].mxu0 }
 0x124   : > { %v497_v14 = vpop.f32.mrb[14].mxu0 }
 0x125   : > { %v548_v15 = vpack.c.bf16 %v497_v14, %v493_v12  ;;  %v499_v16 = vpop.f32.mrb[15].mxu0  ;;  %v2558_v12 = vld [vmem:[%s3207_s7] sm:$0xff] }
 0x126   : > { %v549_v17 = vpack.c.bf16 %v499_v16, %v495_v13 }
 0x128   : > { %1921 = vmatprep.subr.bf16.mxu1 %v549_v17 }
 0x129   : > { %1922 = vmatpush3.bf16.msra.mxu1 %v549_v17 }
 0x12a   : > { %v503_v18 = vpop.f32.mrb[16].mxu0 }
 0x12b   : > { %v505_v19 = vpop.f32.mrb[17].mxu0 }
 0x12c   : > { %v507_v20 = vpop.f32.mrb[18].mxu0 }
 0x12d   : > { %v550_v21 = vpack.c.bf16 %v507_v20, %v503_v18  ;;  %v509_v22 = vpop.f32.mrb[19].mxu0 }
 0x12e   : > { %v551_v23 = vpack.c.bf16 %v509_v22, %v505_v19 }
 0x130   : > { %1923 = vmatprep.subr.bf16.mxu1 %v551_v23 }
 0x131   : > { %1924 = vmatpush3.bf16.msra.mxu1 %v551_v23 }
 0x132   : > { %v513_v24 = vpop.f32.mrb[20].mxu0 }
 0x133   : > { %v515_v25 = vpop.f32.mrb[21].mxu0 }
 0x134   : > { %v517_v26 = vpop.f32.mrb[22].mxu0 }
 0x135   : > { %v552_v27 = vpack.c.bf16 %v517_v26, %v513_v24  ;;  %v519_v28 = vpop.f32.mrb[23].mxu0 }
 0x136   : > { %v553_v29 = vpack.c.bf16 %v519_v28, %v515_v25 }
 0x138   : > { %1925 = vmatprep.subr.bf16.mxu1 %v553_v29 }
 0x139   : > { %1926 = vmatpush3.bf16.msra.mxu1 %v553_v29 }
 0x13a   : > { %v523_v30 = vpop.f32.mrb[24].mxu0 }
 0x13b   : > { %v525_v31 = vpop.f32.mrb[25].mxu0 }
 0x13c   : > { %v527_v32 = vpop.f32.mrb[26].mxu0 }
 0x13d   : > { %v554_v35 = vpack.c.bf16 %v527_v32, %v523_v30  ;;  %v529_v38 = vpop.f32.mrb[27].mxu0 }
 0x13e   : > { %v555_v41 = vpack.c.bf16 %v529_v38, %v525_v31 }
 0x140   : > { %1927 = vmatprep.subr.bf16.mxu1 %v555_v41 }
 0x141   : > { %1928 = vmatpush3.bf16.msra.mxu1 %v555_v41 }
 0x142   : > { %v533_v44 = vpop.f32.mrb[28].mxu0 }
 0x143   : > { %v535_v47 = vpop.f32.mrb[29].mxu0 }
 0x144   : > { %v537_v50 = vpop.f32.mrb[30].mxu0 }
 0x145   : > { %v556_v53 = vpack.c.bf16 %v537_v50, %v533_v44  ;;  %v539_v56 = vpop.f32.mrb[31].mxu0 }
 0x146   : > { %v557_v57 = vpack.c.bf16 %v539_v56, %v535_v47 }
 0x148   : > { %1929 = vmatprep.subr.bf16.mxu1 %v557_v57 }
 0x149   : > { %1930 = vmatpush3.bf16.msra.mxu1 %v557_v57 }
 0x14a   : > { %1947 = vmatprep.subr.bf16.mxu1 %v2502_v61 }
 0x14c   : > { %1932 = vmatmul.mubr.bf16.vlgmr.msra.gmra.mrb[0].mxu1 %v2093_v58 }
 0x14d   : > { %1948 = vmatpush3.bf16.msra.mxu1 %v2502_v61  ;;  %1935 = vmatprep.mubr.bf16.mxu1 %v2094_v59  ;;  %v2097_v61 = vld [vmem:[%s3202_s2 + $0x28] sm:$0xff]  }
 0x14e   : > { %1949 = vmatprep.subr.bf16.mxu1 %v544_v3 }
 0x151   : > { %1950 = vmatpush3.bf16.msra.mxu1 %v544_v3  ;;  %v2102_v3 = vld [vmem:[%s3201_s1 + $0x10] sm:$0xff]  }
 0x152   : > { %1951 = vmatprep.subr.bf16.mxu1 %v546_v9 }
 0x154   : > { %1936 = vmatmul.mubr.bf16.gmra.mrb[4].mxu1 %v2095_v60 }
 0x155   : > { %1952 = vmatpush3.bf16.msra.mxu1 %v546_v9  ;;  %1939 = vmatprep.mubr.bf16.mxu1 %v2096_v62  ;;  %v896_v9 = vlaneseq }
 0x156   : > { %1953 = vmatprep.subr.bf16.mxu1 %v548_v15 }
 0x157   : > { %v2552_v10 = vshrl.u32 %v896_v9, 7 }
 0x159   : > { %1954 = vmatpush3.bf16.msra.mxu1 %v548_v15  ;;  %v898_v11 = vsub.s32 0, %v2552_v10 }
 0x15a   : > { %1955 = vmatprep.subr.bf16.mxu1 %v550_v21 }
 0x15b   : > { %v2561_v13 = vrot.slane %v2558_v12, %v898_v11 }
 0x15c   : > { %1940 = vmatmul.mubr.bf16.gmra.mrb[8].mxu1 %v2097_v61 }
 0x15d   : > { %1956 = vmatpush3.bf16.msra.mxu1 %v550_v21  ;;  %1943 = vmatprep.mubr.bf16.mxu1 %v2098_v63 }
 0x15e   : > { %1957 = vmatprep.subr.bf16.mxu1 %v552_v27 }
 0x161   : > { %1958 = vmatpush3.bf16.msra.mxu1 %v552_v27 }
 0x162   : > { %1959 = vmatprep.subr.bf16.mxu1 %v554_v35 }
 0x164   : > { %1944 = vmatmul.mubr.bf16.gmra.mrb[12].mxu1 %v2099_v0  ;;  %v2110_v0 = vld [vmem:[%s3204_s4 + $0x10] sm:$0xff]  }
 0x165   : > { %1960 = vmatpush3.bf16.msra.mxu1 %v554_v35  ;;  %1963 = vmatprep.mubr.bf16.mxu1 %v2100_v1  ;;  %v2111_v1 = vld [vmem:[%s3204_s4 + $0x18] sm:$0xff]  }
 0x166   : > { %1961 = vmatprep.subr.bf16.mxu1 %v556_v53 }
 0x169   : > { %1962 = vmatpush3.bf16.msra.mxu1 %v556_v53 }
 0x16c   : > { %1964 = vmatmul.mubr.bf16.vlgmr.msra.gmra.mrb[0].mxu1 %v2101_v2  ;;  %v2112_v2 = vld [vmem:[%s3204_s4 + $0x20] sm:$0xff]  }
 0x16d   : > { %1967 = vmatprep.mubr.bf16.mxu1 %v2102_v3  ;;  %v2659_v3 = vand.u32 127, %v896_v9 }
 0x16f   : > { %vm966_vm0 = vcmp.lt.s32.totalorder %v2659_v3, 32 }
 0x174   : > { %1968 = vmatmul.mubr.bf16.gmra.mrb[4].mxu1 %v2103_v4 }
 0x175   : > { %1971 = vmatprep.mubr.bf16.mxu1 %v2104_v5 }
 0x17c   : > { %1972 = vmatmul.mubr.bf16.gmra.mrb[8].mxu1 %v2105_v6 }
 0x17d   : > { %1975 = vmatprep.mubr.bf16.mxu1 %v2106_v7 }
 0x184   : > { %1976 = vmatmul.mubr.bf16.gmra.mrb[12].mxu1 %v2107_v8 }
 0x23f   : > { %v1965_v14 = vpop.f32.mrb[0].mxu1 }
 0x240   : > { %v882_v15 = vadd.f32 %v1965_v14, %v2411_v36  ;;  %v817_v16 = vpop.f32.mrb[1].mxu1 }
 0x241   : > { %v880_v17 = vadd.f32 %v817_v16, %v2399_v33  ;;  %v1966_v18 = vpop.f32.mrb[2].mxu1 }
 0x242   : > { %v883_v19 = vadd.f32 %v1966_v18, %v2416_v37  ;;  %v820_v20 = vpop.f32.mrb[3].mxu1  ;;  %v2567_v21 = vadd.f32 %v2561_v13, %v882_v15 }
 0x243   : > { %v881_v22 = vadd.f32 %v820_v20, %v2404_v34  ;;  %v2571_v23 = vadd.f32 %v2561_v13, %v880_v17 }
 0x244   : > { %920 = vadd.xlane.f32.xlu1 %v2567_v21  ;;  %v2576_v36 = vadd.f32 %v2561_v13, %v883_v19 }
 0x245   : > { %916 = vadd.xlane.f32.xlu0 %v2571_v23  ;;  %v2579_v24 = vadd.f32 %v2561_v13, %v881_v22 }
 0x247   : > { %v1969_v33 = vpop.f32.mrb[4].mxu1 }
 0x248   : > { %922 = vadd.xlane.f32.xlu1 %v2576_v36  ;;  %v833_v37 = vpop.f32.mrb[5].mxu1  ;;  %v886_v27 = vadd.f32 %v1969_v33, %v2438_v42 }
 0x249   : > { %v884_v25 = vadd.f32 %v833_v37, %v2425_v39  ;;  %918 = vadd.xlane.f32.xlu0 %v2579_v24  ;;  %v1970_v34 = vpop.f32.mrb[6].mxu1 }
 0x24a   : > { %v836_v26 = vpop.f32.mrb[7].mxu1  ;;  %v887_v30 = vadd.f32 %v1970_v34, %v2443_v43  ;;  %v2596_v32 = vadd.f32 %v2561_v13, %v886_v27 }
 0x24b   : > { %v885_v28 = vadd.f32 %v836_v26, %v2430_v40  ;;  %v2587_v29 = vadd.f32 %v2561_v13, %v884_v25 }
 0x24c   : > { %v2601_v38 = vadd.f32 %v2561_v13, %v887_v30 }
 0x24d   : > { %924 = vadd.xlane.f32.xlu0 %v2587_v29  ;;  %v2592_v31 = vadd.f32 %v2561_v13, %v885_v28 }
 0x24f   : > { %926 = vadd.xlane.f32.xlu1 %v2592_v31  ;;  %v1973_v39 = vpop.f32.mrb[8].mxu1 }
 0x250   : > { %v849_v35 = vpop.f32.mrb[9].mxu1  ;;  %v890_v41 = vadd.f32 %v1973_v39, %v2464_v48 }
 0x251   : > { %v888_v42 = vadd.f32 %v849_v35, %v2451_v45  ;;  %928 = vadd.xlane.f32.xlu0 %v2596_v32  ;;  %v1974_v40 = vpop.f32.mrb[10].mxu1 }
 0x252   : > { %v852_v43 = vpop.f32.mrb[11].mxu1  ;;  %v891_v50 = vadd.f32 %v1974_v40, %v2469_v49  ;;  %v2616_v56 = vadd.f32 %v2561_v13, %v890_v41 }
 0x253   : > { %v889_v44 = vadd.f32 %v852_v43, %v2456_v46  ;;  %930 = vadd.xlane.f32.xlu1 %v2601_v38  ;;  %v2607_v47 = vadd.f32 %v2561_v13, %v888_v42 }
 0x254   : > { %v2621_v58 = vadd.f32 %v2561_v13, %v891_v50 }
 0x255   : > { %932 = vadd.xlane.f32.xlu0 %v2607_v47  ;;  %v2612_v45 = vadd.f32 %v2561_v13, %v889_v44 }
 0x257   : > { %934 = vadd.xlane.f32.xlu1 %v2612_v45  ;;  %v1977_v53 = vpop.f32.mrb[12].mxu1 }
 0x258   : > { %v865_v48 = vpop.f32.mrb[13].mxu1  ;;  %v894_v59 = vadd.f32 %v1977_v53, %v2490_v54  ;;  %v2108_v54 = vld [vmem:[%s3204_s4] sm:$0xff]  }
 0x259   : > { %v892_v46 = vadd.f32 %v865_v48, %v2477_v51  ;;  %936 = vadd.xlane.f32.xlu0 %v2616_v56  ;;  %v1978_v57 = vpop.f32.mrb[14].mxu1  ;;  %1979 = vmatprep.subr.bf16.mxu0 %v2108_v54 }
 0x25a   : > { %v868_v49 = vpop.f32.mrb[15].mxu1  ;;  %v895_v61 = vadd.f32 %v1978_v57, %v2495_v55  ;;  %v2636_v63 = vadd.f32 %v2561_v13, %v894_v59  ;;  %v2109_v55 = vld [vmem:[%s3204_s4 + $0x8] sm:$0xff]   ;;  %1980 = vmatpush3.bf16.msra.mxu0 %v2108_v54 }
 0x25b   : > { %v893_v60 = vadd.f32 %v868_v49, %v2482_v52  ;;  %938 = vadd.xlane.f32.xlu1 %v2621_v58  ;;  %v2627_v62 = vadd.f32 %v2561_v13, %v892_v46  ;;  %1981 = vmatprep.subr.bf16.mxu0 %v2109_v55 }
 0x25c   : > { %v2640_v52 = vadd.f32 %v2561_v13, %v895_v61 }
 0x25d   : > { %940 = vadd.xlane.f32.xlu0 %v2627_v62  ;;  %v2632_v51 = vadd.f32 %v2561_v13, %v893_v60 }
 0x25e   : > { %1982 = vmatpush3.bf16.msra.mxu0 %v2109_v55 }
 0x25f   : > { %942 = vadd.xlane.f32.xlu1 %v2632_v51  ;;  %1983 = vmatprep.subr.bf16.mxu0 %v2110_v0 }
 0x261   : > { %944 = vadd.xlane.f32.xlu0 %v2636_v63 }
 0x262   : > { %1984 = vmatpush3.bf16.msra.mxu0 %v2110_v0 }
 0x263   : > { %946 = vadd.xlane.f32.xlu1 %v2640_v52  ;;  %1985 = vmatprep.subr.bf16.mxu0 %v2111_v1 }
 0x266   : > { %1986 = vmatpush3.bf16.msra.mxu0 %v2111_v1 }
 0x267   : > { %1987 = vmatprep.subr.bf16.mxu0 %v2112_v2 }
 0x26a   : > { %1988 = vmatpush3.bf16.msra.mxu0 %v2112_v2 }
 0x2d1   : > { %v921_v4 = vpop.xlane.xlu1 %920 }
 0x2d2   : > { %v950_v5 = vmul.f32 0.03125, %v921_v4  ;;  %v917_v6 = vpop.xlane.xlu0 %916 }
 0x2d3   : > { %v948_v7 = vmul.f32 0.03125, %v917_v6 }
 0x2d4   : > { %v969_v8 = vsub.f32 %v2567_v21, %v950_v5 }
 0x2d5   : > { %v967_v11 = vsub.f32 %v2571_v23, %v948_v7  ;;  %v923_v13 = vpop.xlane.xlu1 %922 }
 0x2d6   : > { %v951_v14 = vmul.f32 0.03125, %v923_v13  ;;  %v919_v15 = vpop.xlane.xlu0 %918  ;;  %v2674_v20 = vsel %vm966_vm0, %v969_v8, 0.0 }
 0x2d7   : > { %v949_v16 = vmul.f32 0.03125, %v919_v15  ;;  %v2666_v17 = vsel %vm966_vm0, %v967_v11, 0.0  ;;  %v1001_v37 = vmul.f32 %v2674_v20, %v2674_v20 }
 0x2d8   : > { %v999_v9 = vmul.f32 %v2666_v17, %v2666_v17  ;;  %v970_v18 = vsub.f32 %v2576_v36, %v951_v14 }
 0x2d9   : > { %v968_v19 = vsub.f32 %v2579_v24, %v949_v16 }
 0x2da   : > { %v925_v21 = vpop.xlane.xlu0 %924  ;;  %1015 = vadd.xlane.f32.xlu0 %v999_v9  ;;  %v2687_v34 = vsel %vm966_vm0, %v970_v18, 0.0 }
 0x2db   : > { %v952_v22 = vmul.f32 0.03125, %v925_v21  ;;  %v2678_v23 = vsel %vm966_vm0, %v968_v19, 0.0 }
 0x2dc   : > { %v927_v33 = vpop.xlane.xlu1 %926  ;;  %v1000_v36 = vmul.f32 %v2678_v23, %v2678_v23 }
 0x2dd   : > { %v971_v24 = vsub.f32 %v2587_v29, %v952_v22  ;;  %v953_v25 = vmul.f32 0.03125, %v927_v33  ;;  %v1002_v29 = vmul.f32 %v2687_v34, %v2687_v34 }
 0x2de   : > { %v929_v26 = vpop.xlane.xlu0 %928  ;;  %1019 = vadd.xlane.f32.xlu0 %v1001_v37  ;;  %1017 = vadd.xlane.f32.xlu1 %v1000_v36 }
 0x2df   : > { %v972_v27 = vsub.f32 %v2592_v31, %v953_v25  ;;  %v954_v28 = vmul.f32 0.03125, %v929_v26  ;;  %v2692_v30 = vsel %vm966_vm0, %v971_v24, 0.0  ;;  %v2114_v26 = vld [vmem:[%s3204_s4 + $0x30] sm:$0xff]  }
 0x2e0   : > { %v931_v39 = vpop.xlane.xlu1 %930  ;;  %v1003_v35 = vmul.f32 %v2692_v30, %v2692_v30 }
 0x2e1   : > { %v973_v42 = vsub.f32 %v2596_v32, %v954_v28  ;;  %v955_v40 = vmul.f32 0.03125, %v931_v39  ;;  %v2701_v43 = vsel %vm966_vm0, %v972_v27, 0.0  ;;  %v2115_v27 = vld [vmem:[%s3204_s4 + $0x38] sm:$0xff]   ;;  %v2116_v28 = vld [vmem:[%s3205_s5] sm:$0xff]   ;;  %v2117_v39 = vld [vmem:[%s3205_s5 + $0x8] sm:$0xff]  }
 0x2e2   : > { %v933_v31 = vpop.xlane.xlu0 %932  ;;  %1023 = vadd.xlane.f32.xlu0 %v1003_v35  ;;  %1021 = vadd.xlane.f32.xlu1 %v1002_v29  ;;  %v1004_v32 = vmul.f32 %v2701_v43, %v2701_v43  ;;  %v2118_v35 = vld [vmem:[%s3205_s5 + $0x10] sm:$0xff]   ;;  %v2119_v29 = vld [vmem:[%s3205_s5 + $0x18] sm:$0xff]  }
 0x2e3   : > { %v974_v41 = vsub.f32 %v2601_v38, %v955_v40  ;;  %v956_v44 = vmul.f32 0.03125, %v933_v31  ;;  %v2706_v50 = vsel %vm966_vm0, %v973_v42, 0.0  ;;  %2011 = vmatprep.subr.bf16.mxu1 %v2116_v28  ;;  %v2120_v42 = vld [vmem:[%s3205_s5 + $0x20] sm:$0xff]   ;;  %v2121_v40 = vld [vmem:[%s3205_s5 + $0x28] sm:$0xff]  }
 0x2e4   : > { %v935_v53 = vpop.xlane.xlu1 %934  ;;  %v1005_v48 = vmul.f32 %v2706_v50, %v2706_v50  ;;  %2012 = vmatpush3.bf16.msra.mxu1 %v2116_v28 }
 0x2e5   : > { %v975_v46 = vsub.f32 %v2607_v47, %v956_v44  ;;  %v957_v57 = vmul.f32 0.03125, %v935_v53  ;;  %v2715_v49 = vsel %vm966_vm0, %v974_v41, 0.0  ;;  %2013 = vmatprep.subr.bf16.mxu1 %v2117_v39 }
 0x2e6   : > { %v937_v38 = vpop.xlane.xlu0 %936  ;;  %1027 = vadd.xlane.f32.xlu0 %v1005_v48  ;;  %1025 = vadd.xlane.f32.xlu1 %v1004_v32  ;;  %v1006_v47 = vmul.f32 %v2715_v49, %v2715_v49 }
 0x2e7   : > { %v976_v59 = vsub.f32 %v2612_v45, %v957_v57  ;;  %v958_v60 = vmul.f32 0.03125, %v937_v38  ;;  %v2720_v61 = vsel %vm966_vm0, %v975_v46, 0.0 }
 0x2e8   : > { %v939_v54 = vpop.xlane.xlu1 %938  ;;  %v1007_v55 = vmul.f32 %v2720_v61, %v2720_v61  ;;  %2014 = vmatpush3.bf16.msra.mxu1 %v2117_v39 }
 0x2e9   : > { %v977_v0 = vsub.f32 %v2616_v56, %v958_v60  ;;  %v959_v1 = vmul.f32 0.03125, %v939_v54  ;;  %v2729_v2 = vsel %vm966_vm0, %v976_v59, 0.0  ;;  %2015 = vmatprep.subr.bf16.mxu1 %v2118_v35 }
 0x2ea   : > { %1031 = vadd.xlane.f32.xlu0 %v1007_v55  ;;  %v941_v45 = vpop.xlane.xlu0 %940  ;;  %1029 = vadd.xlane.f32.xlu1 %v1006_v47  ;;  %v1008_v56 = vmul.f32 %v2729_v2, %v2729_v2 }
 0x2eb   : > { %v978_v4 = vsub.f32 %v2621_v58, %v959_v1  ;;  %v960_v5 = vmul.f32 0.03125, %v941_v45  ;;  %v2734_v6 = vsel %vm966_vm0, %v977_v0, 0.0 }
 0x2ec   : > { %v943_v7 = vpop.xlane.xlu1 %942  ;;  %v1009_v8 = vmul.f32 %v2734_v6, %v2734_v6  ;;  %2016 = vmatpush3.bf16.msra.mxu1 %v2118_v35 }
 0x2ed   : > { %v979_v11 = vsub.f32 %v2627_v62, %v960_v5  ;;  %v961_v13 = vmul.f32 0.03125, %v943_v7  ;;  %v2743_v14 = vsel %vm966_vm0, %v978_v4, 0.0  ;;  %2017 = vmatprep.subr.bf16.mxu1 %v2119_v29  ;;  %v1113_v7 = vsub.s32 2, %v2552_v10 }
 0x2ee   : > { %1035 = vadd.xlane.f32.xlu0 %v1009_v8  ;;  %v945_v58 = vpop.xlane.xlu0 %944  ;;  %1033 = vadd.xlane.f32.xlu1 %v1008_v56  ;;  %v1010_v62 = vmul.f32 %v2743_v14, %v2743_v14 }
 0x2ef   : > { %v980_v15 = vsub.f32 %v2632_v51, %v961_v13  ;;  %v962_v16 = vmul.f32 0.03125, %v945_v58  ;;  %v2748_v9 = vsel %vm966_vm0, %v979_v11, 0.0 }
 0x2f0   : > { %v947_v18 = vpop.xlane.xlu1 %946  ;;  %v1011_v19 = vmul.f32 %v2748_v9, %v2748_v9  ;;  %2018 = vmatpush3.bf16.msra.mxu1 %v2119_v29 }
 0x2f1   : > { %v981_v21 = vsub.f32 %v2636_v63, %v962_v16  ;;  %v963_v22 = vmul.f32 0.03125, %v947_v18  ;;  %v2757_v33 = vsel %vm966_vm0, %v980_v15, 0.0  ;;  %2019 = vmatprep.subr.bf16.mxu1 %v2120_v42  ;;  %v2803_v18 = vrot.slane %v2558_v12, %v1113_v7 }
 0x2f2   : > { %1039 = vadd.xlane.f32.xlu0 %v1011_v19  ;;  %1037 = vadd.xlane.f32.xlu1 %v1010_v62  ;;  %v1012_v24 = vmul.f32 %v2757_v33, %v2757_v33  ;;  %v1133_v62 = vsub.s32 3, %v2552_v10 }
 0x2f3   : > { %v982_v51 = vsub.f32 %v2640_v52, %v963_v22  ;;  %v2762_v37 = vsel %vm966_vm0, %v981_v21, 0.0  ;;  %v2113_v52 = vld [vmem:[%s3204_s4 + $0x28] sm:$0xff]  }
 0x2f4   : > { %v1013_v36 = vmul.f32 %v2762_v37, %v2762_v37  ;;  %1989 = vmatprep.subr.bf16.mxu0 %v2113_v52  ;;  %2020 = vmatpush3.bf16.msra.mxu1 %v2120_v42 }
 0x2f5   : > { %v2770_v63 = vsel %vm966_vm0, %v982_v51, 0.0  ;;  %1990 = vmatpush3.bf16.msra.mxu0 %v2113_v52  ;;  %2021 = vmatprep.subr.bf16.mxu1 %v2121_v40 }
 0x2f6   : > { %1043 = vadd.xlane.f32.xlu0 %v1013_v36  ;;  %1041 = vadd.xlane.f32.xlu1 %v1012_v24  ;;  %v1014_v25 = vmul.f32 %v2770_v63, %v2770_v63 }
 0x2f7   : > { %1991 = vmatprep.subr.bf16.mxu0 %v2114_v26 }
 0x2f8   : > { %2022 = vmatpush3.bf16.msra.mxu1 %v2121_v40 }
 0x2f9   : > { %1992 = vmatpush3.bf16.msra.mxu0 %v2114_v26 }
 0x2fa   : > { %1045 = vadd.xlane.f32.xlu1 %v1014_v25  ;;  %1993 = vmatprep.subr.bf16.mxu0 %v2115_v27 }
 0x2fd   : > { %1994 = vmatpush3.bf16.msra.mxu0 %v2115_v27 }
 0x367   : > { %v1016_v31 = vpop.xlane.xlu0 %1015 }
 0x368   : > { %v1047_v41 = vmul.f32 0.03125, %v1016_v31 }
 0x36a   : > { %v1063_v44 = vadd.f32 1e-05, %v1047_v41 }
 0x36b   : > { %v1020_v53 = vpop.xlane.xlu0 %1019  ;;  %v1018_v48 = vpop.xlane.xlu1 %1017 }
 0x36c   : > { %2124 = vrsqrt.f32 %v1063_v44  ;;  %v1049_v32 = vmul.f32 0.03125, %v1020_v53  ;;  %v1048_v46 = vmul.f32 0.03125, %v1018_v48 }
 0x36e   : > { %v1065_v57 = vadd.f32 1e-05, %v1049_v32  ;;  %v1064_v38 = vadd.f32 1e-05, %v1048_v46 }
 0x36f   : > { %v1024_v59 = vpop.xlane.xlu0 %1023  ;;  %v1022_v60 = vpop.xlane.xlu1 %1021 }
 0x370   : > { %2126 = vrsqrt.f32 %v1065_v57  ;;  %v1051_v54 = vmul.f32 0.03125, %v1024_v59  ;;  %v1050_v55 = vmul.f32 0.03125, %v1022_v60 }
 0x371   : > { %2128 = vrsqrt.f32 %v1064_v38 }
 0x372   : > { %v1067_v47 = vadd.f32 1e-05, %v1051_v54  ;;  %v1066_v0 = vadd.f32 1e-05, %v1050_v55 }
 0x373   : > { %v1028_v1 = vpop.xlane.xlu0 %1027  ;;  %v1026_v45 = vpop.xlane.xlu1 %1025 }
 0x374   : > { %2130 = vrsqrt.f32 %v1067_v47  ;;  %v1053_v4 = vmul.f32 0.03125, %v1028_v1  ;;  %v1052_v5 = vmul.f32 0.03125, %v1026_v45 }
 0x375   : > { %2132 = vrsqrt.f32 %v1066_v0 }
 0x376   : > { %v2125_v8 = vpop.eup %2124  ;;  %v1069_v56 = vadd.f32 1e-05, %v1053_v4  ;;  %v1068_v11 = vadd.f32 1e-05, %v1052_v5 }
 0x377   : > { %v1032_v13 = vpop.xlane.xlu0 %1031  ;;  %v1030_v58 = vpop.xlane.xlu1 %1029  ;;  %v1095_v19 = vmul.f32 %v2125_v8, %v2666_v17  ;;  %v2811_v17 = vrot.slane %v2558_v12, %v1133_v62 }
 0x378   : > { %2134 = vrsqrt.f32 %v1069_v56  ;;  %v1055_v15 = vmul.f32 0.03125, %v1032_v13  ;;  %v1054_v16 = vmul.f32 0.03125, %v1030_v58 }
 0x379   : > { %2136 = vrsqrt.f32 %v1068_v11  ;;  %v1115_v39 = vmul.f32 %v2803_v18, %v1095_v19 }
 0x37a   : > { %v2127_v21 = vpop.eup %2126  ;;  %v1071_v22 = vadd.f32 1e-05, %v1055_v15  ;;  %v1070_v51 = vadd.f32 1e-05, %v1054_v16 }
 0x37b   : > { %v2129_v36 = vpop.eup %2128  ;;  %v1097_v24 = vmul.f32 %v2127_v21, %v2674_v20  ;;  %v1036_v25 = vpop.xlane.xlu0 %1035  ;;  %v2817_v32 = vadd.f32 %v2811_v17, %v1115_v39 }
 0x37c   : > { %v1034_v52 = vpop.xlane.xlu1 %1033  ;;  %2138 = vrsqrt.f32 %v1071_v22  ;;  %v1057_v26 = vmul.f32 0.03125, %v1036_v25  ;;  %v1096_v28 = vmul.f32 %v2129_v36, %v2678_v23 }
 0x37d   : > { %v1056_v27 = vmul.f32 0.03125, %v1034_v52  ;;  %2140 = vrsqrt.f32 %v1070_v51  ;;  %v1117_v20 = vmul.f32 %v2803_v18, %v1097_v24 }
 0x37e   : > { %v2131_v35 = vpop.eup %2130  ;;  %v1073_v29 = vadd.f32 1e-05, %v1057_v26  ;;  %v1116_v40 = vmul.f32 %v2803_v18, %v1096_v28 }
 0x37f   : > { %v1072_v42 = vadd.f32 1e-05, %v1056_v27  ;;  %v2133_v31 = vpop.eup %2132  ;;  %v1040_v41 = vpop.xlane.xlu0 %1039  ;;  %v1099_v57 = vmul.f32 %v2131_v35, %v2692_v30  ;;  %v2827_v1 = vadd.f32 %v2811_v17, %v1117_v20 }
 0x380   : > { %v1038_v44 = vpop.xlane.xlu1 %1037  ;;  %v1098_v53 = vmul.f32 %v2133_v31, %v2687_v34  ;;  %2142 = vrsqrt.f32 %v1073_v29  ;;  %v1059_v23 = vmul.f32 0.03125, %v1040_v41  ;;  %v2820_v46 = vadd.f32 %v2811_v17, %v1116_v40 }
 0x381   : > { %v1058_v48 = vmul.f32 0.03125, %v1038_v44  ;;  %2144 = vrsqrt.f32 %v1072_v42  ;;  %v1119_v8 = vmul.f32 %v2803_v18, %v1099_v57 }
 0x382   : > { %v2135_v38 = vpop.eup %2134  ;;  %v1118_v59 = vmul.f32 %v2803_v18, %v1098_v53  ;;  %v1075_v60 = vadd.f32 1e-05, %v1059_v23  ;;  %v1151_v34 = vpack.c.bf16 %v2820_v46, %v2817_v32 }
 0x383   : > { %v1074_v54 = vadd.f32 1e-05, %v1058_v48  ;;  %v2137_v55 = vpop.eup %2136  ;;  %v1044_v47 = vpop.xlane.xlu0 %1043  ;;  %v1101_v45 = vmul.f32 %v2135_v38, %v2706_v50  ;;  %v2842_v22 = vadd.f32 %v2811_v17, %v1119_v8 }
 0x384   : > { %v1042_v0 = vpop.xlane.xlu1 %1041  ;;  %2146 = vrsqrt.f32 %v1075_v60  ;;  %v1061_v4 = vmul.f32 0.03125, %v1044_v47  ;;  %v2831_v30 = vadd.f32 %v2811_v17, %v1118_v59  ;;  %1995 = vmatprep.mubr.bf16.mxu0 %v1151_v34  ;;  %v1100_v7 = vmul.f32 %v2137_v55, %v2701_v43 }
 0x385   : > { %v1060_v5 = vmul.f32 0.03125, %v1042_v0  ;;  %2148 = vrsqrt.f32 %v1074_v54  ;;  %v1121_v19 = vmul.f32 %v2803_v18, %v1101_v45 }
 0x386   : > { %v2139_v56 = vpop.eup %2138  ;;  %v1077_v11 = vadd.f32 1e-05, %v1061_v4  ;;  %v1152_v58 = vpack.c.bf16 %v2831_v30, %v2827_v1  ;;  %v1120_v16 = vmul.f32 %v2803_v18, %v1100_v7  ;;  %v2122_v7 = vld [vmem:[%s3205_s5 + $0x30] sm:$0xff]  }
 0x387   : > { %v1076_v13 = vadd.f32 1e-05, %v1060_v5  ;;  %v2141_v15 = vpop.eup %2140  ;;  %v1103_v62 = vmul.f32 %v2139_v56, %v2720_v61  ;;  %v2851_v26 = vadd.f32 %v2811_v17, %v1121_v19  ;;  %2023 = vmatprep.subr.bf16.mxu1 %v2122_v7 }
 0x388   : > { %v1046_v50 = vpop.xlane.xlu1 %1045  ;;  %2150 = vrsqrt.f32 %v1077_v11  ;;  %1996 = vmatmul.mubr.bf16.vlgmr.msra.gmra.mrb[32].mxu0 %v1152_v58  ;;  %v1102_v43 = vmul.f32 %v2141_v15, %v2715_v49  ;;  %v2845_v51 = vadd.f32 %v2811_v17, %v1120_v16  ;;  %2024 = vmatpush3.bf16.msra.mxu1 %v2122_v7 }
 0x389   : > { %v1062_v21 = vmul.f32 0.03125, %v1046_v50  ;;  %2152 = vrsqrt.f32 %v1076_v13  ;;  %v1123_v49 = vmul.f32 %v2803_v18, %v1103_v62 }
 0x38a   : > { %v2143_v36 = vpop.eup %2142  ;;  %v1122_v25 = vmul.f32 %v2803_v18, %v1102_v43  ;;  %v1153_v61 = vpack.c.bf16 %v2845_v51, %v2842_v22 }
 0x38b   : > { %v1078_v24 = vadd.f32 1e-05, %v1062_v21  ;;  %v2145_v52 = vpop.eup %2144  ;;  %v1105_v39 = vmul.f32 %v2143_v36, %v2734_v6  ;;  %v2863_v31 = vadd.f32 %v2811_v17, %v1123_v49 }
 0x38c   : > { %v2855_v27 = vadd.f32 %v2811_v17, %v1122_v25  ;;  %v1104_v28 = vmul.f32 %v2145_v52, %v2729_v2  ;;  %1999 = vmatprep.mubr.bf16.mxu0 %v1153_v61 }
 0x38d   : > { %2154 = vrsqrt.f32 %v1078_v24  ;;  %v1125_v2 = vmul.f32 %v2803_v18, %v1105_v39 }
 0x38e   : > { %v2147_v35 = vpop.eup %2146  ;;  %v1154_v29 = vpack.c.bf16 %v2855_v27, %v2851_v26  ;;  %v1124_v42 = vmul.f32 %v2803_v18, %v1104_v28 }
 0x38f   : > { %v2149_v40 = vpop.eup %2148  ;;  %v1107_v6 = vmul.f32 %v2147_v35, %v2748_v9  ;;  %v2876_v38 = vadd.f32 %v2811_v17, %v1125_v2 }
 0x390   : > { %2000 = vmatmul.mubr.bf16.gmra.mrb[36].mxu0 %v1154_v29  ;;  %v2866_v20 = vadd.f32 %v2811_v17, %v1124_v42  ;;  %v1106_v41 = vmul.f32 %v2149_v40, %v2743_v14 }
 0x391   : > { %v1127_v9 = vmul.f32 %v2803_v18, %v1107_v6 }
 0x392   : > { %v2151_v44 = vpop.eup %2150  ;;  %v1155_v53 = vpack.c.bf16 %v2866_v20, %v2863_v31  ;;  %v1126_v23 = vmul.f32 %v2803_v18, %v1106_v41 }
 0x393   : > { %v2153_v48 = vpop.eup %2152  ;;  %v1109_v57 = vmul.f32 %v2151_v44, %v2762_v37  ;;  %v2889_v34 = vadd.f32 %v2811_v17, %v1127_v9 }
 0x394   : > { %2003 = vmatprep.mubr.bf16.mxu0 %v1155_v53  ;;  %v2879_v59 = vadd.f32 %v2811_v17, %v1126_v23  ;;  %v1108_v14 = vmul.f32 %v2153_v48, %v2757_v33 }
 0x395   : > { %v1129_v37 = vmul.f32 %v2803_v18, %v1109_v57 }
 0x396   : > { %v1156_v54 = vpack.c.bf16 %v2879_v59, %v2876_v38  ;;  %v1128_v55 = vmul.f32 %v2803_v18, %v1108_v14 }
 0x397   : > { %v2155_v60 = vpop.eup %2154  ;;  %v2898_v4 = vadd.f32 %v2811_v17, %v1129_v37 }
 0x398   : > { %v1110_v47 = vmul.f32 %v2155_v60, %v2770_v63  ;;  %2004 = vmatmul.mubr.bf16.gmra.mrb[40].mxu0 %v1156_v54  ;;  %v2892_v0 = vadd.f32 %v2811_v17, %v1128_v55 }
 0x39a   : > { %v1130_v33 = vmul.f32 %v2803_v18, %v1110_v47  ;;  %v1157_v45 = vpack.c.bf16 %v2892_v0, %v2889_v34  ;;  %v2123_v18 = vld [vmem:[%s3205_s5 + $0x38] sm:$0xff]  }
 0x39b   : > { %2025 = vmatprep.subr.bf16.mxu1 %v2123_v18 }
 0x39c   : > { %v2901_v5 = vadd.f32 %v2811_v17, %v1130_v33  ;;  %2007 = vmatprep.mubr.bf16.mxu0 %v1157_v45  ;;  %2026 = vmatpush3.bf16.msra.mxu1 %v2123_v18  ;;  %v1832_v17 = vld [vmem:[%s3206_s6] ss:$0 sm:$0xff] }
 0x39e   : > { %v1158_v63 = vpack.c.bf16 %v2901_v5, %v2898_v4 }
 0x3a0   : > { %2008 = vmatmul.mubr.bf16.gmra.mrb[44].mxu0 %v1158_v63 }
 0x45b   : > { %v1997_v8 = vpop.f32.mrb[32].mxu0 }
 0x45c   : > { %v1273_v56 = vadd.f32 %v1997_v8, %v1832_v17  ;;  %v1264_v11 = vpop.f32.mrb[33].mxu0 }
 0x45d   : > { %v1265_v13 = vadd.f32 %v1832_v17, %v1264_v11  ;;  %v1998_v58 = vpop.f32.mrb[34].mxu0 }
 0x45e   : > { %v1276_v15 = vadd.f32 %v1998_v58, %v1832_v17  ;;  %v1267_v50 = vpop.f32.mrb[35].mxu0  ;;  %v1329_v19 = vmax.f32 %v1273_v56, 0.0 }
 0x45f   : > { %v1268_v16 = vadd.f32 %v1832_v17, %v1267_v50  ;;  %v1327_v21 = vmax.f32 %v1265_v13, 0.0 }
 0x460   : > { %v1330_v62 = vmax.f32 %v1276_v15, 0.0 }
 0x461   : > { %v1328_v43 = vmax.f32 %v1268_v16, 0.0 }
 0x462   : > { %v1344_v36 = vpack.c.bf16 %v1330_v62, %v1329_v19 }
 0x463   : > { %v1343_v24 = vpack.c.bf16 %v1328_v43, %v1327_v21  ;;  %v2001_v25 = vpop.f32.mrb[36].mxu0 }
 0x464   : > { %v1289_v52 = vadd.f32 %v2001_v25, %v1832_v17  ;;  %v1280_v61 = vpop.f32.mrb[37].mxu0 }
 0x465   : > { %v1281_v49 = vadd.f32 %v1832_v17, %v1280_v61  ;;  %v2002_v28 = vpop.f32.mrb[38].mxu0  ;;  %2027 = vmatprep.mubr.bf16.mxu1 %v1343_v24 }
 0x466   : > { %v1292_v39 = vadd.f32 %v2002_v28, %v1832_v17  ;;  %v1283_v35 = vpop.f32.mrb[39].mxu0  ;;  %2028 = vmatmul.mubr.bf16.vlgmr.msra.gmra.mrb[16].mxu1 %v1344_v36  ;;  %v1333_v42 = vmax.f32 %v1289_v52, 0.0  ;;  %v1369_v36 = vsub.s32 1, %v2552_v10 }
 0x467   : > { %v1284_v29 = vadd.f32 %v1832_v17, %v1283_v35  ;;  %v1331_v41 = vmax.f32 %v1281_v49, 0.0 }
 0x468   : > { %v1334_v40 = vmax.f32 %v1292_v39, 0.0  ;;  %v1370_v24 = vrot.slane %v2558_v12, %v1369_v36 }
 0x469   : > { %v1332_v2 = vmax.f32 %v1284_v29, 0.0 }
 0x46a   : > { %v1346_v6 = vpack.c.bf16 %v1334_v40, %v1333_v42 }
 0x46b   : > { %v1345_v44 = vpack.c.bf16 %v1332_v2, %v1331_v41  ;;  %v2005_v53 = vpop.f32.mrb[40].mxu0 }
 0x46c   : > { %v1305_v23 = vadd.f32 %v2005_v53, %v1832_v17  ;;  %v1296_v48 = vpop.f32.mrb[41].mxu0 }
 0x46d   : > { %v1297_v57 = vadd.f32 %v1832_v17, %v1296_v48  ;;  %v2006_v14 = vpop.f32.mrb[42].mxu0  ;;  %2031 = vmatprep.mubr.bf16.mxu1 %v1345_v44 }
 0x46e   : > { %v1308_v9 = vadd.f32 %v2006_v14, %v1832_v17  ;;  %v1299_v60 = vpop.f32.mrb[43].mxu0  ;;  %2032 = vmatmul.mubr.bf16.gmra.mrb[20].mxu1 %v1346_v6  ;;  %v1337_v55 = vmax.f32 %v1305_v23, 0.0 }
 0x46f   : > { %v1300_v54 = vadd.f32 %v1832_v17, %v1299_v60  ;;  %v1335_v37 = vmax.f32 %v1297_v57, 0.0 }
 0x470   : > { %v1338_v47 = vmax.f32 %v1308_v9, 0.0 }
 0x471   : > { %v1336_v33 = vmax.f32 %v1300_v54, 0.0 }
 0x472   : > { %v1348_v45 = vpack.c.bf16 %v1338_v47, %v1337_v55 }
 0x473   : > { %v1347_v63 = vpack.c.bf16 %v1336_v33, %v1335_v37  ;;  %v2009_v7 = vpop.f32.mrb[44].mxu0 }
 0x474   : > { %v1321_v18 = vadd.f32 %v2009_v7, %v1832_v17  ;;  %v1312_v8 = vpop.f32.mrb[45].mxu0 }
 0x475   : > { %v1313_v56 = vadd.f32 %v1832_v17, %v1312_v8  ;;  %v2010_v11 = vpop.f32.mrb[46].mxu0  ;;  %2035 = vmatprep.mubr.bf16.mxu1 %v1347_v63 }
 0x476   : > { %v1324_v13 = vadd.f32 %v2010_v11, %v1832_v17  ;;  %v1315_v58 = vpop.f32.mrb[47].mxu0  ;;  %2036 = vmatmul.mubr.bf16.gmra.mrb[24].mxu1 %v1348_v45  ;;  %v1341_v50 = vmax.f32 %v1321_v18, 0.0 }
 0x477   : > { %v1316_v15 = vadd.f32 %v1832_v17, %v1315_v58  ;;  %v1339_v19 = vmax.f32 %v1313_v56, 0.0 }
 0x478   : > { %v1342_v16 = vmax.f32 %v1324_v13, 0.0 }
 0x479   : > { %v1340_v62 = vmax.f32 %v1316_v15, 0.0 }
 0x47a   : > { %v1350_v21 = vpack.c.bf16 %v1342_v16, %v1341_v50 }
 0x47b   : > { %v1349_v43 = vpack.c.bf16 %v1340_v62, %v1339_v19 }
 0x47d   : > { %2039 = vmatprep.mubr.bf16.mxu1 %v1349_v43 }
 0x47e   : > { %2040 = vmatmul.mubr.bf16.gmra.mrb[28].mxu1 %v1350_v21 }
 0x539   : > { %v2029_v25 = vpop.f32.mrb[16].mxu1 }
 0x53a   : > { %v1462_v52 = vadd.f32 %v2029_v25, %v1370_v24  ;;  %v1453_v61 = vpop.f32.mrb[17].mxu1 }
 0x53b   : > { %v2030_v49 = vpop.f32.mrb[18].mxu1  ;;  %v1454_v28 = vadd.f32 %v1453_v61, %v1370_v24 }
 0x53c   : > { %v1465_v39 = vadd.f32 %v2030_v49, %v1370_v24  ;;  %v1456_v35 = vpop.f32.mrb[19].mxu1  ;;  %v2917_v17 = vadd.f32 %v1462_v52, %v2827_v1 }
 0x53d   : > { %v1457_v29 = vadd.f32 %v1456_v35, %v1370_v24  ;;  %v2925_v12 = vadd.f32 %v1454_v28, %v2817_v32 }
 0x53e   : > { %1536 = vadd.xlane.f32.xlu0 %v2917_v17  ;;  %v2921_v42 = vadd.f32 %v1465_v39, %v2831_v30 }
 0x53f   : > { %v2929_v6 = vadd.f32 %v1457_v29, %v2820_v46 }
 0x540   : > { %1538 = vadd.xlane.f32.xlu1 %v2921_v42 }
 0x541   : > { %v2033_v40 = vpop.f32.mrb[20].mxu1 }
 0x542   : > { %v1478_v41 = vadd.f32 %v2033_v40, %v1370_v24  ;;  %1532 = vadd.xlane.f32.xlu0 %v2925_v12  ;;  %v1469_v2 = vpop.f32.mrb[21].mxu1 }
 0x543   : > { %v2034_v1 = vpop.f32.mrb[22].mxu1  ;;  %v1470_v44 = vadd.f32 %v1469_v2, %v1370_v24 }
 0x544   : > { %v1481_v53 = vadd.f32 %v2034_v1, %v1370_v24  ;;  %1534 = vadd.xlane.f32.xlu1 %v2929_v6  ;;  %v1472_v30 = vpop.f32.mrb[23].mxu1  ;;  %v2933_v23 = vadd.f32 %v1478_v41, %v2851_v26 }
 0x545   : > { %v1473_v48 = vadd.f32 %v1472_v30, %v1370_v24  ;;  %v2941_v46 = vadd.f32 %v1470_v44, %v2842_v22 }
 0x546   : > { %1544 = vadd.xlane.f32.xlu0 %v2933_v23  ;;  %v2937_v32 = vadd.f32 %v1481_v53, %v2855_v27 }
 0x547   : > { %v2945_v60 = vadd.f32 %v1473_v48, %v2845_v51 }
 0x548   : > { %1546 = vadd.xlane.f32.xlu1 %v2937_v32 }
 0x549   : > { %v2037_v57 = vpop.f32.mrb[24].mxu1 }
 0x54a   : > { %v1494_v14 = vadd.f32 %v2037_v57, %v1370_v24  ;;  %1540 = vadd.xlane.f32.xlu0 %v2941_v46  ;;  %v1485_v9 = vpop.f32.mrb[25].mxu1 }
 0x54b   : > { %v2038_v26 = vpop.f32.mrb[26].mxu1  ;;  %v1486_v54 = vadd.f32 %v1485_v9, %v1370_v24 }
 0x54c   : > { %v1497_v55 = vadd.f32 %v2038_v26, %v1370_v24  ;;  %1542 = vadd.xlane.f32.xlu1 %v2945_v60  ;;  %v1488_v27 = vpop.f32.mrb[27].mxu1  ;;  %v2949_v47 = vadd.f32 %v1494_v14, %v2876_v38 }
 0x54d   : > { %v1489_v37 = vadd.f32 %v1488_v27, %v1370_v24  ;;  %v2957_v51 = vadd.f32 %v1486_v54, %v2863_v31 }
 0x54e   : > { %1552 = vadd.xlane.f32.xlu0 %v2949_v47  ;;  %v2953_v22 = vadd.f32 %v1497_v55, %v2879_v59 }
 0x54f   : > { %v2961_v63 = vadd.f32 %v1489_v37, %v2866_v20 }
 0x550   : > { %1554 = vadd.xlane.f32.xlu1 %v2953_v22 }
 0x551   : > { %v2041_v33 = vpop.f32.mrb[28].mxu1 }
 0x552   : > { %1548 = vadd.xlane.f32.xlu0 %v2957_v51  ;;  %v1501_v45 = vpop.f32.mrb[29].mxu1  ;;  %v1510_v8 = vadd.f32 %v2041_v33, %v1370_v24 }
 0x553   : > { %v1502_v38 = vadd.f32 %v1501_v45, %v1370_v24  ;;  %v2042_v7 = vpop.f32.mrb[30].mxu1 }
 0x554   : > { %1550 = vadd.xlane.f32.xlu1 %v2961_v63  ;;  %v1504_v18 = vpop.f32.mrb[31].mxu1  ;;  %v1513_v11 = vadd.f32 %v2042_v7, %v1370_v24  ;;  %v2973_v20 = vadd.f32 %v1510_v8, %v2898_v4 }
 0x555   : > { %v1505_v59 = vadd.f32 %v1504_v18, %v1370_v24  ;;  %v2965_v56 = vadd.f32 %v1502_v38, %v2889_v34 }
 0x556   : > { %v2977_v13 = vadd.f32 %v1513_v11, %v2901_v5 }
 0x557   : > { %1556 = vadd.xlane.f32.xlu0 %v2965_v56  ;;  %v2969_v31 = vadd.f32 %v1505_v59, %v2892_v0 }
 0x559   : > { %1558 = vadd.xlane.f32.xlu1 %v2969_v31 }
 0x55b   : > { %1560 = vadd.xlane.f32.xlu0 %v2973_v20 }
 0x55d   : > { %1562 = vadd.xlane.f32.xlu1 %v2977_v13 }
 0x5cb   : > { %v1537_v34 = vpop.xlane.xlu0 %1536 }
 0x5cc   : > { %v1566_v58 = vmul.f32 0.03125, %v1537_v34 }
 0x5cd   : > { %v1539_v15 = vpop.xlane.xlu1 %1538 }
 0x5ce   : > { %v1582_v50 = vsub.f32 %v2917_v17, %v1566_v58  ;;  %v1567_v16 = vmul.f32 0.03125, %v1539_v15 }
 0x5cf   : > { %v1533_v0 = vpop.xlane.xlu0 %1532 }
 0x5d0   : > { %v1583_v19 = vsub.f32 %v2921_v42, %v1567_v16  ;;  %v1564_v62 = vmul.f32 0.03125, %v1533_v0  ;;  %v2984_v4 = vsel %vm966_vm0, %v1582_v50, 0.0 }
 0x5d1   : > { %v1535_v21 = vpop.xlane.xlu1 %1534  ;;  %v1614_v5 = vmul.f32 %v2984_v4, %v2984_v4 }
 0x5d2   : > { %v1580_v43 = vsub.f32 %v2925_v12, %v1564_v62  ;;  %v1565_v36 = vmul.f32 0.03125, %v1535_v21  ;;  %v2991_v24 = vsel %vm966_vm0, %v1583_v19, 0.0 }
 0x5d3   : > { %v1545_v25 = vpop.xlane.xlu0 %1544  ;;  %1632 = vadd.xlane.f32.xlu0 %v1614_v5  ;;  %v1615_v52 = vmul.f32 %v2991_v24, %v2991_v24 }
 0x5d4   : > { %v1581_v61 = vsub.f32 %v2929_v6, %v1565_v36  ;;  %v1570_v49 = vmul.f32 0.03125, %v1545_v25  ;;  %v2998_v28 = vsel %vm966_vm0, %v1580_v43, 0.0 }
 0x5d5   : > { %1634 = vadd.xlane.f32.xlu1 %v1615_v52  ;;  %v1547_v39 = vpop.xlane.xlu1 %1546  ;;  %v1612_v35 = vmul.f32 %v2998_v28, %v2998_v28 }
 0x5d6   : > { %v1586_v17 = vsub.f32 %v2933_v23, %v1570_v49  ;;  %v1571_v29 = vmul.f32 0.03125, %v1547_v39  ;;  %v3005_v42 = vsel %vm966_vm0, %v1581_v61, 0.0 }
 0x5d7   : > { %v1541_v12 = vpop.xlane.xlu0 %1540  ;;  %1628 = vadd.xlane.f32.xlu0 %v1612_v35  ;;  %v1613_v40 = vmul.f32 %v3005_v42, %v3005_v42 }
 0x5d8   : > { %v1587_v41 = vsub.f32 %v2937_v32, %v1571_v29  ;;  %v1568_v2 = vmul.f32 0.03125, %v1541_v12  ;;  %v3012_v6 = vsel %vm966_vm0, %v1586_v17, 0.0 }
 0x5d9   : > { %1630 = vadd.xlane.f32.xlu1 %v1613_v40  ;;  %v1543_v1 = vpop.xlane.xlu1 %1542  ;;  %v1618_v44 = vmul.f32 %v3012_v6, %v3012_v6 }
 0x5da   : > { %v1584_v53 = vsub.f32 %v2941_v46, %v1568_v2  ;;  %v1569_v30 = vmul.f32 0.03125, %v1543_v1  ;;  %v3019_v23 = vsel %vm966_vm0, %v1587_v41, 0.0 }
 0x5db   : > { %v1553_v48 = vpop.xlane.xlu0 %1552  ;;  %1640 = vadd.xlane.f32.xlu0 %v1618_v44  ;;  %v1619_v32 = vmul.f32 %v3019_v23, %v3019_v23 }
 0x5dc   : > { %v1585_v57 = vsub.f32 %v2945_v60, %v1569_v30  ;;  %v1574_v14 = vmul.f32 0.03125, %v1553_v48  ;;  %v3026_v9 = vsel %vm966_vm0, %v1584_v53, 0.0 }
 0x5dd   : > { %1642 = vadd.xlane.f32.xlu1 %v1619_v32  ;;  %v1555_v26 = vpop.xlane.xlu1 %1554  ;;  %v1616_v46 = vmul.f32 %v3026_v9, %v3026_v9 }
 0x5de   : > { %v1590_v54 = vsub.f32 %v2949_v47, %v1574_v14  ;;  %v1575_v55 = vmul.f32 0.03125, %v1555_v26  ;;  %v3033_v27 = vsel %vm966_vm0, %v1585_v57, 0.0  ;;  %v1726_v14 = vsub.s32 4, %v2552_v10 }
 0x5df   : > { %v1549_v37 = vpop.xlane.xlu0 %1548  ;;  %1636 = vadd.xlane.f32.xlu0 %v1616_v46  ;;  %v1617_v60 = vmul.f32 %v3033_v27, %v3033_v27 }
 0x5e0   : > { %v1591_v33 = vsub.f32 %v2953_v22, %v1575_v55  ;;  %v1572_v45 = vmul.f32 0.03125, %v1549_v37  ;;  %v3040_v38 = vsel %vm966_vm0, %v1590_v54, 0.0  ;;  %v1746_v55 = vsub.s32 5, %v2552_v10 }
 0x5e1   : > { %1638 = vadd.xlane.f32.xlu1 %v1617_v60  ;;  %v1551_v7 = vpop.xlane.xlu1 %1550  ;;  %v1622_v47 = vmul.f32 %v3040_v38, %v3040_v38 }
 0x5e2   : > { %v1588_v18 = vsub.f32 %v2957_v51, %v1572_v45  ;;  %v1573_v8 = vmul.f32 0.03125, %v1551_v7  ;;  %v3047_v59 = vsel %vm966_vm0, %v1591_v33, 0.0  ;;  %v2188_v45 = vld [vmem:[%s3207_s7] sm:$0xff] }
 0x5e3   : > { %1648 = vadd.xlane.f32.xlu0 %v1622_v47  ;;  %v1623_v22 = vmul.f32 %v3047_v59, %v3047_v59  ;;  %v3097_v7 = vrot.slane %v2188_v45, %v1726_v14 }
 0x5e4   : > { %v1589_v11 = vsub.f32 %v2961_v63, %v1573_v8  ;;  %v1557_v34 = vpop.xlane.xlu0 %1556  ;;  %v3054_v58 = vsel %vm966_vm0, %v1588_v18, 0.0 }
 0x5e5   : > { %v1576_v15 = vmul.f32 0.03125, %v1557_v34  ;;  %1650 = vadd.xlane.f32.xlu1 %v1623_v22  ;;  %v1620_v51 = vmul.f32 %v3054_v58, %v3054_v58 }
 0x5e6   : > { %v1559_v50 = vpop.xlane.xlu1 %1558  ;;  %v3060_v16 = vsel %vm966_vm0, %v1589_v11, 0.0  ;;  %v3099_v11 = vrot.slane %v2188_v45, %v1746_v55 }
 0x5e7   : > { %v1592_v0 = vsub.f32 %v2965_v56, %v1576_v15  ;;  %v1577_v19 = vmul.f32 0.03125, %v1559_v50  ;;  %1644 = vadd.xlane.f32.xlu0 %v1620_v51  ;;  %v1621_v63 = vmul.f32 %v3060_v16, %v3060_v16 }
 0x5e8   : > { %v1561_v62 = vpop.xlane.xlu0 %1560 }
 0x5e9   : > { %v1593_v21 = vsub.f32 %v2969_v31, %v1577_v19  ;;  %v1578_v5 = vmul.f32 0.03125, %v1561_v62  ;;  %1646 = vadd.xlane.f32.xlu1 %v1621_v63  ;;  %v3068_v43 = vsel %vm966_vm0, %v1592_v0, 0.0 }
 0x5ea   : > { %v1563_v36 = vpop.xlane.xlu1 %1562  ;;  %v1624_v25 = vmul.f32 %v3068_v43, %v3068_v43 }
 0x5eb   : > { %v1594_v56 = vsub.f32 %v2973_v20, %v1578_v5  ;;  %v1579_v52 = vmul.f32 0.03125, %v1563_v36  ;;  %v3075_v61 = vsel %vm966_vm0, %v1593_v21, 0.0 }
 0x5ec   : > { %1652 = vadd.xlane.f32.xlu0 %v1624_v25  ;;  %v1625_v31 = vmul.f32 %v3075_v61, %v3075_v61 }
 0x5ed   : > { %v1595_v49 = vsub.f32 %v2977_v13, %v1579_v52  ;;  %v3082_v39 = vsel %vm966_vm0, %v1594_v56, 0.0 }
 0x5ee   : > { %1654 = vadd.xlane.f32.xlu1 %v1625_v31  ;;  %v1626_v35 = vmul.f32 %v3082_v39, %v3082_v39 }
 0x5ef   : > { %v3088_v20 = vsel %vm966_vm0, %v1595_v49, 0.0 }
 0x5f0   : > { %1656 = vadd.xlane.f32.xlu0 %v1626_v35  ;;  %v1627_v17 = vmul.f32 %v3088_v20, %v3088_v20 }
 0x5f2   : > { %1658 = vadd.xlane.f32.xlu1 %v1627_v17 }
 0x660   : > { %v1633_v29 = vpop.xlane.xlu0 %1632 }
 0x661   : > { %v1662_v12 = vmul.f32 0.03125, %v1633_v29 }
 0x662   : > { %v1635_v13 = vpop.xlane.xlu1 %1634 }
 0x663   : > { %v1678_v40 = vadd.f32 1e-05, %v1662_v12  ;;  %v1663_v41 = vmul.f32 0.03125, %v1635_v13 }
 0x664   : > { %v1629_v2 = vpop.xlane.xlu0 %1628 }
 0x665   : > { %2156 = vrsqrt.f32 %v1678_v40  ;;  %v1679_v1 = vadd.f32 1e-05, %v1663_v41  ;;  %v1660_v44 = vmul.f32 0.03125, %v1629_v2 }
 0x666   : > { %v1631_v53 = vpop.xlane.xlu1 %1630 }
 0x667   : > { %2158 = vrsqrt.f32 %v1679_v1  ;;  %v1676_v30 = vadd.f32 1e-05, %v1660_v44  ;;  %v1661_v3 = vmul.f32 0.03125, %v1631_v53 }
 0x668   : > { %v1641_v48 = vpop.xlane.xlu0 %1640 }
 0x669   : > { %2160 = vrsqrt.f32 %v1676_v30  ;;  %v1677_v32 = vadd.f32 1e-05, %v1661_v3  ;;  %v1666_v57 = vmul.f32 0.03125, %v1641_v48 }
 0x66a   : > { %v1643_v26 = vpop.xlane.xlu1 %1642 }
 0x66b   : > { %2162 = vrsqrt.f32 %v1677_v32  ;;  %v1682_v46 = vadd.f32 1e-05, %v1666_v57  ;;  %v1667_v54 = vmul.f32 0.03125, %v1643_v26 }
 0x66c   : > { %v1637_v37 = vpop.xlane.xlu0 %1636 }
 0x66d   : > { %2164 = vrsqrt.f32 %v1682_v46  ;;  %v1683_v60 = vadd.f32 1e-05, %v1667_v54  ;;  %v1664_v33 = vmul.f32 0.03125, %v1637_v37 }
 0x66e   : > { %v1639_v47 = vpop.xlane.xlu1 %1638 }
 0x66f   : > { %v2157_v18 = vpop.eup %2156  ;;  %2166 = vrsqrt.f32 %v1683_v60  ;;  %v1680_v8 = vadd.f32 1e-05, %v1664_v33  ;;  %v1665_v22 = vmul.f32 0.03125, %v1639_v47 }
 0x670   : > { %v1710_v34 = vmul.f32 %v2157_v18, %v2984_v4  ;;  %v1649_v10 = vpop.xlane.xlu0 %1648 }
 0x671   : > { %v2159_v15 = vpop.eup %2158  ;;  %2168 = vrsqrt.f32 %v1680_v8  ;;  %v1681_v51 = vadd.f32 1e-05, %v1665_v22  ;;  %v1670_v50 = vmul.f32 0.03125, %v1649_v10 }
 0x672   : > { %v1730_v0 = vmul.f32 %v3097_v7, %v1710_v34  ;;  %v1711_v19 = vmul.f32 %v2159_v15, %v2991_v24  ;;  %v1651_v63 = vpop.xlane.xlu1 %1650 }
 0x673   : > { %v2161_v62 = vpop.eup %2160  ;;  %2170 = vrsqrt.f32 %v1681_v51  ;;  %v1686_v21 = vadd.f32 1e-05, %v1670_v50  ;;  %v1671_v5 = vmul.f32 0.03125, %v1651_v63 }
 0x674   : > { %v1750_v36 = vadd.f32 %v3099_v11, %v1730_v0  ;;  %v1731_v25 = vmul.f32 %v3097_v7, %v1711_v19  ;;  %v1708_v4 = vmul.f32 %v2161_v62, %v2998_v28  ;;  %v1645_v56 = vpop.xlane.xlu0 %1644 }
 0x675   : > { %v2163_v52 = vpop.eup %2162  ;;  %2172 = vrsqrt.f32 %v1686_v21  ;;  %v1687_v31 = vadd.f32 1e-05, %v1671_v5  ;;  %v1668_v49 = vmul.f32 0.03125, %v1645_v56 }
 0x676   : > { %1766 = vst [vmem:[%s3208_s8 + $0x10] sm:$0xff] %v1750_v36  ;;  %v1751_v24 = vadd.f32 %v3099_v11, %v1731_v25  ;;  %v1728_v35 = vmul.f32 %v3097_v7, %v1708_v4  ;;  %v1709_v17 = vmul.f32 %v2163_v52, %v3005_v42  ;;  %v1647_v29 = vpop.xlane.xlu1 %1646 }
 0x677   : > { %v2165_v12 = vpop.eup %2164  ;;  %2174 = vrsqrt.f32 %v1687_v31  ;;  %v1684_v13 = vadd.f32 1e-05, %v1668_v49  ;;  %v1669_v28 = vmul.f32 0.03125, %v1647_v29 }
 0x678   : > { %1767 = vst [vmem:[%s3208_s8 + $0x18] sm:$0xff] %v1751_v24  ;;  %v1748_v40 = vadd.f32 %v3099_v11, %v1728_v35  ;;  %v1729_v41 = vmul.f32 %v3097_v7, %v1709_v17  ;;  %v1714_v2 = vmul.f32 %v2165_v12, %v3012_v6 }
 0x679   : > { %v2167_v1 = vpop.eup %2166  ;;  %2176 = vrsqrt.f32 %v1684_v13  ;;  %v1685_v44 = vadd.f32 1e-05, %v1669_v28  ;;  %v1653_v53 = vpop.xlane.xlu0 %1652 }
 0x67a   : > { %1764 = vst [vmem:[%s3208_s8] sm:$0xff] %v1748_v40  ;;  %v1749_v42 = vadd.f32 %v3099_v11, %v1729_v41  ;;  %v1734_v30 = vmul.f32 %v3097_v7, %v1714_v2  ;;  %v1715_v3 = vmul.f32 %v2167_v1, %v3019_v23  ;;  %v1672_v48 = vmul.f32 0.03125, %v1653_v53 }
 0x67b   : > { %v2169_v32 = vpop.eup %2168  ;;  %2178 = vrsqrt.f32 %v1685_v44  ;;  %v1655_v57 = vpop.xlane.xlu1 %1654 }
 0x67c   : > { %1765 = vst [vmem:[%s3208_s8 + $0x8] sm:$0xff] %v1749_v42  ;;  %v1754_v6 = vadd.f32 %v3099_v11, %v1734_v30  ;;  %v1735_v14 = vmul.f32 %v3097_v7, %v1715_v3  ;;  %v1712_v26 = vmul.f32 %v2169_v32, %v3026_v9  ;;  %v1688_v46 = vadd.f32 1e-05, %v1672_v48 }
 0x67d   : > { %v2171_v54 = vpop.eup %2170  ;;  %v1673_v55 = vmul.f32 0.03125, %v1655_v57  ;;  %v1657_v37 = vpop.xlane.xlu0 %1656 }
 0x67e   : > { %1770 = vst [vmem:[%s3208_s8 + $0x30] sm:$0xff] %v1754_v6  ;;  %v1755_v23 = vadd.f32 %v3099_v11, %v1735_v14  ;;  %v1732_v60 = vmul.f32 %v3097_v7, %v1712_v26  ;;  %v1713_v33 = vmul.f32 %v2171_v54, %v3033_v27  ;;  %2180 = vrsqrt.f32 %v1688_v46 }
 0x67f   : > { %v2173_v45 = vpop.eup %2172  ;;  %v1689_v47 = vadd.f32 1e-05, %v1673_v55  ;;  %v1674_v18 = vmul.f32 0.03125, %v1657_v37  ;;  %v1659_v8 = vpop.xlane.xlu1 %1658 }
 0x680   : > { %1771 = vst [vmem:[%s3208_s8 + $0x38] sm:$0xff] %v1755_v23  ;;  %v1752_v9 = vadd.f32 %v3099_v11, %v1732_v60  ;;  %v1733_v22 = vmul.f32 %v3097_v7, %v1713_v33  ;;  %v1718_v34 = vmul.f32 %v2173_v45, %v3040_v38  ;;  %v1675_v10 = vmul.f32 0.03125, %v1659_v8 }
 0x681   : > { %v2175_v15 = vpop.eup %2174  ;;  %2182 = vrsqrt.f32 %v1689_v47  ;;  %v1690_v51 = vadd.f32 1e-05, %v1674_v18 }
 0x682   : > { %1768 = vst [vmem:[%s3208_s8 + $0x20] sm:$0xff] %v1752_v9  ;;  %v1753_v27 = vadd.f32 %v3099_v11, %v1733_v22  ;;  %v1738_v50 = vmul.f32 %v3097_v7, %v1718_v34  ;;  %v1719_v0 = vmul.f32 %v2175_v15, %v3047_v59  ;;  %v1691_v19 = vadd.f32 1e-05, %v1675_v10 }
 0x683   : > { %v2177_v63 = vpop.eup %2176  ;;  %2184 = vrsqrt.f32 %v1690_v51 }
 0x684   : > { %1769 = vst [vmem:[%s3208_s8 + $0x28] sm:$0xff] %v1753_v27  ;;  %v1758_v38 = vadd.f32 %v3099_v11, %v1738_v50  ;;  %v1739_v62 = vmul.f32 %v3097_v7, %v1719_v0  ;;  %v1716_v21 = vmul.f32 %v2177_v63, %v3054_v58  ;;  %2186 = vrsqrt.f32 %v1691_v19 }
 0x685   : > { %v2179_v5 = vpop.eup %2178 }
 0x686   : > { %1774 = vst [vmem:[%s3208_s8 + $0x50] sm:$0xff] %v1758_v38  ;;  %v1759_v59 = vadd.f32 %v3099_v11, %v1739_v62  ;;  %v1736_v36 = vmul.f32 %v3097_v7, %v1716_v21  ;;  %v1717_v25 = vmul.f32 %v2179_v5, %v3060_v16 }
 0x688   : > { %v2181_v4 = vpop.eup %2180  ;;  %1775 = vst [vmem:[%s3208_s8 + $0x58] sm:$0xff] %v1759_v59  ;;  %v1756_v56 = vadd.f32 %v3099_v11, %v1736_v36  ;;  %v1737_v58 = vmul.f32 %v3097_v7, %v1717_v25 }
 0x689   : > { %v1720_v52 = vmul.f32 %v2181_v4, %v3068_v43 }
 0x68a   : > { %1772 = vst [vmem:[%s3208_s8 + $0x40] sm:$0xff] %v1756_v56  ;;  %v1757_v31 = vadd.f32 %v3099_v11, %v1737_v58 }
 0x68b   : > { %v2183_v49 = vpop.eup %2182  ;;  %v1740_v16 = vmul.f32 %v3097_v7, %v1720_v52 }
 0x68c   : > { %1773 = vst [vmem:[%s3208_s8 + $0x48] sm:$0xff] %v1757_v31  ;;  %v1721_v24 = vmul.f32 %v2183_v49, %v3075_v61 }
 0x68d   : > { %v2185_v35 = vpop.eup %2184  ;;  %v1760_v17 = vadd.f32 %v3099_v11, %v1740_v16 }
 0x68e   : > { %v2187_v29 = vpop.eup %2186  ;;  %v1741_v43 = vmul.f32 %v3097_v7, %v1721_v24  ;;  %v1722_v12 = vmul.f32 %v2185_v35, %v3082_v39 }
 0x68f   : > { %1776 = vst [vmem:[%s3208_s8 + $0x60] sm:$0xff] %v1760_v17  ;;  %v1723_v13 = vmul.f32 %v2187_v29, %v3088_v20 }
 0x690   : > { %v1761_v28 = vadd.f32 %v3099_v11, %v1741_v43  ;;  %v1742_v40 = vmul.f32 %v3097_v7, %v1722_v12 }
 0x691   : > { %v1743_v61 = vmul.f32 %v3097_v7, %v1723_v13 }
 0x692   : > { %1777 = vst [vmem:[%s3208_s8 + $0x68] sm:$0xff] %v1761_v28  ;;  %v1762_v41 = vadd.f32 %v3099_v11, %v1742_v40 }
 0x693   : > { %v1763_v39 = vadd.f32 %v3099_v11, %v1743_v61 }
 0x694   : > { %1778 = vst [vmem:[%s3208_s8 + $0x70] sm:$0xff] %v1762_v41 }
 0x695   : > { %1779 = vst [vmem:[%s3208_s8 + $0x78] sm:$0xff] %v1763_v39 }
 0x696 PF: > { %s18_s27 = sadd.s32 1, %s2195_s27  }
 0x697   : > { %p15_p4 = scmp.ge.s32.totalorder %s18_s27, 4  }
 0x699   :  { %17 = sbr.rel (!%p15_p4) target bundleno = 1 (0x1), region = 79 }

</bundles_post_ra>
